<compile_context>
chip_gen: v7x
topology: tpu7x:2x2x1
jax: 0.10.0
libtpu: 0.0.40
codegen_flags: <defaults>
</compile_context>

<pallas_src>
import functools

import jax
import jax.numpy as jnp
from jax.experimental import pallas as pl
from jax.experimental.pallas import tpu as pltpu


# ----------------------------------------------------------------------------
# Pallas kernel: one Cin-chunk of a 3x3 conv over the flattened padded input.
# ----------------------------------------------------------------------------
def _conv3x3_kernel(x_ref, w_ref, b_ref, o_ref, acc_ref, *, Wp, relu, nk):
    # x_ref  : (Mp, Ck)          bf16, Mp = N*(H+2)*(W+2), Ck = Cin chunk
    # w_ref  : (3, 3, Ck, Cout)  bf16
    # b_ref  : (1, Cout)         f32
    # o_ref  : (Mp, Cout)        bf16 (padded layout; valid rows sliced outside)
    # acc_ref: (Mp, Cout) f32 VMEM scratch (used only when nk > 1)
    c = pl.program_id(0)
    x = x_ref[...]
    Mp = x.shape[0]

    # Partial conv for this Cin chunk: 9 matmuls; the tap offset d = kh*Wp+kw
    # is applied to the f32 result via an XLU sublane roll (result[m] <-
    # y[m + d]); wrapped rows only land in padded positions that are discarded.
    s = None
    for kh in range(3):
        for kw in range(3):
            y = jnp.dot(x, w_ref[kh, kw], preferred_element_type=jnp.float32)
            d = kh * Wp + kw
            if d:
                y = pltpu.roll(y, shift=Mp - d, axis=0)
            s = y if s is None else s + y

    if nk == 1:
        # Single Cin chunk: no cross-step accumulation, skip the scratch
        # round trip entirely (matters for the big-M late layers).
        out = s + b_ref[...]
        if relu:
            out = jnp.maximum(out, 0.0)
        o_ref[...] = out.astype(o_ref.dtype)
    else:
        @pl.when(c == 0)
        def _():
            acc_ref[...] = s

        @pl.when(c > 0)
        def _():
            acc_ref[...] = acc_ref[...] + s

        @pl.when(c == nk - 1)
        def _():
            out = acc_ref[...] + b_ref[...]
            if relu:
                out = jnp.maximum(out, 0.0)
            o_ref[...] = out.astype(o_ref.dtype)


def conv3x3_reflect(x, w_hwio, b, relu):
    """ReflectionPad2d(1) + Conv2d(Cin,Cout,3) [+ ReLU].

    x: (N, H, W, Cin) bf16; w_hwio: (3, 3, Cin, Cout) bf16; b: (Cout,) f32.
    Returns (N, H, W, Cout) bf16.  `relu` must be a static Python bool.
    """
    N, H, W, Cin = x.shape
    Cout = int(w_hwio.shape[-1])
    Hp, Wp = H + 2, W + 2
    Mp = N * Hp * Wp

    # Pad very narrow output-channel counts (final 64->3 conv) to a lane-dense
    # width; sliced back after the kernel.  Cheap: that layer is tiny.
    Cout_p = Cout if Cout >= 64 else 128
    if Cout_p != Cout:
        w_hwio = jnp.pad(w_hwio, ((0, 0), (0, 0), (0, 0), (0, Cout_p - Cout)))
        b = jnp.pad(b, (0, Cout_p - Cout))

    # Reflection pad (== nn.ReflectionPad2d((1,1,1,1))) + flatten to a 2D
    # (rows, Cin) slab; wrapper-side XLA ops that fuse into one copy.
    xp = jnp.pad(x, ((0, 0), (1, 1), (1, 1), (0, 0)), mode="reflect")
    x2 = xp.reshape(Mp, Cin)
    b2 = b.reshape(1, Cout_p).astype(jnp.float32)

    Ck = min(Cin, 128)           # Cin reduction chunk (streams weights)
    assert Cin % Ck == 0
    nk = Cin // Ck

    kernel = functools.partial(_conv3x3_kernel, Wp=Wp, relu=relu, nk=nk)
    y2 = pl.pallas_call(
        kernel,
        out_shape=jax.ShapeDtypeStruct((Mp, Cout_p), jnp.bfloat16),
        grid=(nk,),
        in_specs=[
            pl.BlockSpec((Mp, Ck), lambda c: (0, c)),
            pl.BlockSpec((3, 3, Ck, Cout_p), lambda c: (0, 0, c, 0)),
            pl.BlockSpec((1, Cout_p), lambda c: (0, 0)),
        ],
        out_specs=pl.BlockSpec((Mp, Cout_p), lambda c: (0, 0)),
        scratch_shapes=[
            pltpu.VMEM((Mp, Cout_p) if nk > 1 else (8, 128), jnp.float32)
        ],
        compiler_params=pltpu.CompilerParams(
            dimension_semantics=("arbitrary",),   # reduction over Cin chunks
            vmem_limit_bytes=48 << 20,            # headroom on v7x (64 MiB phys)
        ),
    )(x2, w_hwio, b2)

    # Drop the padded rows / padded channels: output for (n, h, w) lives at
    # flat row n*Hp*Wp + h*Wp + w.
    y = y2.reshape(N, Hp, Wp, Cout_p)[:, :H, :W, :Cout]
    return y


def upsample_nearest_2x(x):
    """NHWC nearest-neighbor 2x upsampling (== nn.UpsamplingNearest2d(2))."""
    return jnp.repeat(jnp.repeat(x, 2, axis=1), 2, axis=2)


# ----------------------------------------------------------------------------
# Decoder definition (mirrors the torch nn.Sequential layer list).
# Each "conv" group == ReflectionPad2d(1) + Conv2d(Cin, Cout, 3) [+ ReLU].
# ----------------------------------------------------------------------------
_GROUPS = [
    ("conv", 512, 512, True),
    ("up",),
    ("conv", 512, 512, True),
    ("conv", 512, 512, True),
    ("conv", 512, 512, True),
    ("conv", 512, 256, True),
    ("up",),
    ("conv", 256, 256, True),
    ("conv", 256, 256, True),
    ("conv", 256, 256, True),
    ("conv", 256, 128, True),
    ("up",),
    ("conv", 128, 128, True),
    ("conv", 128, 64, True),
    ("up",),
    ("conv", 64, 64, True),
    ("conv", 64, 3, False),  # final conv: no ReLU
]
# torch indices {1: 40, 2: 33, 3: 26, 4: 13, 5: 0} -> group start indices
_DEPTH_TO_START = {1: 16, 2: 13, 3: 10, 4: 5, 5: 0}


def init_decoder_params(depth, seed=0):
    """Deterministic PyTorch-style init; weights stored HWIO bf16, bias f32."""
    start = _DEPTH_TO_START[depth]
    key = jax.random.PRNGKey(seed)
    params = []
    for idx, g in enumerate(_GROUPS[start:]):
        if g[0] == "up":
            continue
        _, cin, cout, _ = g
        k_w = jax.random.fold_in(key, 2 * idx + 1)
        k_b = jax.random.fold_in(key, 2 * idx + 2)
        bound = 1.0 / float(cin * 9) ** 0.5
        w_oihw = jax.random.uniform(
            k_w, (cout, cin, 3, 3), jnp.float32, minval=-bound, maxval=bound
        )
        bias = jax.random.uniform(
            k_b, (cout,), jnp.float32, minval=-bound, maxval=bound
        )
        w_hwio = jnp.transpose(w_oihw, (2, 3, 1, 0)).astype(jnp.bfloat16)
        params.append((w_hwio, bias))
    return params


def vgg19_decoder_forward(x_nchw, params, depth):
    """Forward pass; x_nchw matches the PyTorch module input layout (f32)."""
    start = _DEPTH_TO_START[depth]
    x = jnp.transpose(x_nchw, (0, 2, 3, 1)).astype(jnp.bfloat16)  # NCHW -> NHWC
    pi = 0
    for g in _GROUPS[start:]:
        if g[0] == "up":
            x = upsample_nearest_2x(x)
        else:
            w_hwio, bias = params[pi]
            pi += 1
            relu = g[3]  # static Python bool (NOT part of the traced params)
            x = conv3x3_reflect(x, w_hwio, bias, relu)
    return jnp.transpose(x, (0, 3, 1, 2)).astype(jnp.float32)  # NHWC -> NCHW


if __name__ == "__main__":
    key = jax.random.PRNGKey(0)
    k_x, k_w, k_b, k_in = jax.random.split(key, 4)

    # --- lightweight correctness self-check of the conv kernel ---------------
    N, H, W, Cin, Cout = 2, 6, 6, 256, 128   # exercises Cin chunking + rolls
    xt = jax.random.normal(k_x, (N, H, W, Cin), jnp.float32)
    wt = jax.random.normal(k_w, (3, 3, Cin, Cout), jnp.float32) * 0.02
    bt = jax.random.normal(k_b, (Cout,), jnp.float32) * 0.1
    out_k = conv3x3_reflect(
        xt.astype(jnp.bfloat16), wt.astype(jnp.bfloat16), bt, True
    ).astype(jnp.float32)
    xp_ref = jnp.pad(xt, ((0, 0), (1, 1), (1, 1), (0, 0)), mode="reflect")
    out_r = jax.lax.conv_general_dilated(
        xp_ref, wt, (1, 1), "VALID",
        dimension_numbers=("NHWC", "HWIO", "NHWC"),
        precision=jax.lax.Precision.HIGHEST,
    ) + bt
    out_r = jnp.maximum(out_r, 0.0)
    max_err = float(jnp.max(jnp.abs(out_k - out_r)))
    assert max_err < 0.15, f"conv self-check failed, max err {max_err}"

    # --- full decoder forward -------------------------------------------------
    depth = 5
    batch, c_in, spatial = 2, 512, 4  # depth=5 decoder expects 512-ch features
    x = jax.random.normal(k_in, (batch, c_in, spatial, spatial), jnp.float32)

    params = init_decoder_params(depth, seed=0)
    fwd = jax.jit(functools.partial(vgg19_decoder_forward, depth=depth))
    out = jax.block_until_ready(fwd(x, params))

    expected = (batch, 3, spatial * 16, spatial * 16)  # 4 upsamplings, 3 out ch
    assert out.shape == expected, (out.shape, expected)
    assert out.dtype == jnp.float32
    print("KERNEL_OK")
</pallas_src>

<mosaic_0001>
module attributes {stable_mosaic.version = 11 : i64} {
  func.func @_conv3x3_kernel(%arg0: i32, %arg1: memref<128x128xbf16, #tpu.memory_space<vmem>>, %arg2: memref<3x3x128x128xbf16, #tpu.memory_space<vmem>>, %arg3: memref<1x128xf32, #tpu.memory_space<vmem>>, %arg4: memref<128x128xbf16, #tpu.memory_space<vmem>>, %arg5: memref<128x128xf32, #tpu.memory_space<vmem>>) attributes {dimension_semantics = [#tpu.dimension_semantics<arbitrary>], iteration_bounds = array<i64: 2>, scalar_prefetch = 0 : i64, scratch_operands = 1 : i64, tpu.core_type = #tpu.core_type<tc>, window_params = [{transform_indices = @transform_0, window_bounds = array<i64: 128, 128>}, {transform_indices = @transform_1, window_bounds = array<i64: 3, 3, 128, 128>}, {pipeline_mode = #tpu.pipeline_mode<synchronous>, transform_indices = @transform_2, window_bounds = array<i64: 1, 128>}, {pipeline_mode = #tpu.pipeline_mode<synchronous>, transform_indices = @transform_3, window_bounds = array<i64: 128, 128>}]} {
    %c0 = arith.constant 0 : index
    %c0_0 = arith.constant 0 : index
    %0 = vector.load %arg1[%c0, %c0_0] : memref<128x128xbf16, #tpu.memory_space<vmem>>, vector<128x128xbf16>
    %c0_1 = arith.constant 0 : index
    %c0_2 = arith.constant 0 : index
    %c0_3 = arith.constant 0 : index
    %c0_4 = arith.constant 0 : index
    %1 = vector.load %arg2[%c0_1, %c0_2, %c0_3, %c0_4] : memref<3x3x128x128xbf16, #tpu.memory_space<vmem>>, vector<1x1x128x128xbf16>
    %2 = vector.shape_cast %1 : vector<1x1x128x128xbf16> to vector<128x128xbf16>
    %cst = arith.constant dense<0.000000e+00> : vector<128x128xf32>
    %3 = tpu.matmul %0, %2, %cst {dimension_numbers = #tpu.dot_dimension_numbers<[1], [0], [0], [1], [0, 0, 1, 1], [], []>} : vector<128x128xbf16>, vector<128x128xbf16>, vector<128x128xf32> -> vector<128x128xf32>
    %c0_5 = arith.constant 0 : index
    %c1 = arith.constant 1 : index
    %c0_6 = arith.constant 0 : index
    %c0_7 = arith.constant 0 : index
    %4 = vector.load %arg2[%c0_5, %c1, %c0_6, %c0_7] : memref<3x3x128x128xbf16, #tpu.memory_space<vmem>>, vector<1x1x128x128xbf16>
    %5 = vector.shape_cast %4 : vector<1x1x128x128xbf16> to vector<128x128xbf16>
    %cst_8 = arith.constant dense<0.000000e+00> : vector<128x128xf32>
    %6 = tpu.matmul %0, %5, %cst_8 {dimension_numbers = #tpu.dot_dimension_numbers<[1], [0], [0], [1], [0, 0, 1, 1], [], []>} : vector<128x128xbf16>, vector<128x128xbf16>, vector<128x128xf32> -> vector<128x128xf32>
    %c127_i32 = arith.constant 127 : i32
    %7 = tpu.dynamic_rotate %6 by %c127_i32 dim 0 : vector<128x128xf32>, i32 -> vector<128x128xf32>
    %8 = arith.addf %3, %7 : vector<128x128xf32>
    %c0_9 = arith.constant 0 : index
    %c2 = arith.constant 2 : index
    %c0_10 = arith.constant 0 : index
    %c0_11 = arith.constant 0 : index
    %9 = vector.load %arg2[%c0_9, %c2, %c0_10, %c0_11] : memref<3x3x128x128xbf16, #tpu.memory_space<vmem>>, vector<1x1x128x128xbf16>
    %10 = vector.shape_cast %9 : vector<1x1x128x128xbf16> to vector<128x128xbf16>
    %cst_12 = arith.constant dense<0.000000e+00> : vector<128x128xf32>
    %11 = tpu.matmul %0, %10, %cst_12 {dimension_numbers = #tpu.dot_dimension_numbers<[1], [0], [0], [1], [0, 0, 1, 1], [], []>} : vector<128x128xbf16>, vector<128x128xbf16>, vector<128x128xf32> -> vector<128x128xf32>
    %c126_i32 = arith.constant 126 : i32
    %12 = tpu.dynamic_rotate %11 by %c126_i32 dim 0 : vector<128x128xf32>, i32 -> vector<128x128xf32>
    %13 = arith.addf %8, %12 : vector<128x128xf32>
    %c1_13 = arith.constant 1 : index
    %c0_14 = arith.constant 0 : index
    %c0_15 = arith.constant 0 : index
    %c0_16 = arith.constant 0 : index
    %14 = vector.load %arg2[%c1_13, %c0_14, %c0_15, %c0_16] : memref<3x3x128x128xbf16, #tpu.memory_space<vmem>>, vector<1x1x128x128xbf16>
    %15 = vector.shape_cast %14 : vector<1x1x128x128xbf16> to vector<128x128xbf16>
    %cst_17 = arith.constant dense<0.000000e+00> : vector<128x128xf32>
    %16 = tpu.matmul %0, %15, %cst_17 {dimension_numbers = #tpu.dot_dimension_numbers<[1], [0], [0], [1], [0, 0, 1, 1], [], []>} : vector<128x128xbf16>, vector<128x128xbf16>, vector<128x128xf32> -> vector<128x128xf32>
    %c120_i32 = arith.constant 120 : i32
    %17 = tpu.dynamic_rotate %16 by %c120_i32 dim 0 : vector<128x128xf32>, i32 -> vector<128x128xf32>
    %18 = arith.addf %13, %17 : vector<128x128xf32>
    %c1_18 = arith.constant 1 : index
    %c1_19 = arith.constant 1 : index
    %c0_20 = arith.constant 0 : index
    %c0_21 = arith.constant 0 : index
    %19 = vector.load %arg2[%c1_18, %c1_19, %c0_20, %c0_21] : memref<3x3x128x128xbf16, #tpu.memory_space<vmem>>, vector<1x1x128x128xbf16>
    %20 = vector.shape_cast %19 : vector<1x1x128x128xbf16> to vector<128x128xbf16>
    %cst_22 = arith.constant dense<0.000000e+00> : vector<128x128xf32>
    %21 = tpu.matmul %0, %20, %cst_22 {dimension_numbers = #tpu.dot_dimension_numbers<[1], [0], [0], [1], [0, 0, 1, 1], [], []>} : vector<128x128xbf16>, vector<128x128xbf16>, vector<128x128xf32> -> vector<128x128xf32>
    %c119_i32 = arith.constant 119 : i32
    %22 = tpu.dynamic_rotate %21 by %c119_i32 dim 0 : vector<128x128xf32>, i32 -> vector<128x128xf32>
    %23 = arith.addf %18, %22 : vector<128x128xf32>
    %c1_23 = arith.constant 1 : index
    %c2_24 = arith.constant 2 : index
    %c0_25 = arith.constant 0 : index
    %c0_26 = arith.constant 0 : index
    %24 = vector.load %arg2[%c1_23, %c2_24, %c0_25, %c0_26] : memref<3x3x128x128xbf16, #tpu.memory_space<vmem>>, vector<1x1x128x128xbf16>
    %25 = vector.shape_cast %24 : vector<1x1x128x128xbf16> to vector<128x128xbf16>
    %cst_27 = arith.constant dense<0.000000e+00> : vector<128x128xf32>
    %26 = tpu.matmul %0, %25, %cst_27 {dimension_numbers = #tpu.dot_dimension_numbers<[1], [0], [0], [1], [0, 0, 1, 1], [], []>} : vector<128x128xbf16>, vector<128x128xbf16>, vector<128x128xf32> -> vector<128x128xf32>
    %c118_i32 = arith.constant 118 : i32
    %27 = tpu.dynamic_rotate %26 by %c118_i32 dim 0 : vector<128x128xf32>, i32 -> vector<128x128xf32>
    %28 = arith.addf %23, %27 : vector<128x128xf32>
    %c2_28 = arith.constant 2 : index
    %c0_29 = arith.constant 0 : index
    %c0_30 = arith.constant 0 : index
    %c0_31 = arith.constant 0 : index
    %29 = vector.load %arg2[%c2_28, %c0_29, %c0_30, %c0_31] : memref<3x3x128x128xbf16, #tpu.memory_space<vmem>>, vector<1x1x128x128xbf16>
    %30 = vector.shape_cast %29 : vector<1x1x128x128xbf16> to vector<128x128xbf16>
    %cst_32 = arith.constant dense<0.000000e+00> : vector<128x128xf32>
    %31 = tpu.matmul %0, %30, %cst_32 {dimension_numbers = #tpu.dot_dimension_numbers<[1], [0], [0], [1], [0, 0, 1, 1], [], []>} : vector<128x128xbf16>, vector<128x128xbf16>, vector<128x128xf32> -> vector<128x128xf32>
    %c112_i32 = arith.constant 112 : i32
    %32 = tpu.dynamic_rotate %31 by %c112_i32 dim 0 : vector<128x128xf32>, i32 -> vector<128x128xf32>
    %33 = arith.addf %28, %32 : vector<128x128xf32>
    %c2_33 = arith.constant 2 : index
    %c1_34 = arith.constant 1 : index
    %c0_35 = arith.constant 0 : index
    %c0_36 = arith.constant 0 : index
    %34 = vector.load %arg2[%c2_33, %c1_34, %c0_35, %c0_36] : memref<3x3x128x128xbf16, #tpu.memory_space<vmem>>, vector<1x1x128x128xbf16>
    %35 = vector.shape_cast %34 : vector<1x1x128x128xbf16> to vector<128x128xbf16>
    %cst_37 = arith.constant dense<0.000000e+00> : vector<128x128xf32>
    %36 = tpu.matmul %0, %35, %cst_37 {dimension_numbers = #tpu.dot_dimension_numbers<[1], [0], [0], [1], [0, 0, 1, 1], [], []>} : vector<128x128xbf16>, vector<128x128xbf16>, vector<128x128xf32> -> vector<128x128xf32>
    %c111_i32 = arith.constant 111 : i32
    %37 = tpu.dynamic_rotate %36 by %c111_i32 dim 0 : vector<128x128xf32>, i32 -> vector<128x128xf32>
    %38 = arith.addf %33, %37 : vector<128x128xf32>
    %c2_38 = arith.constant 2 : index
    %c2_39 = arith.constant 2 : index
    %c0_40 = arith.constant 0 : index
    %c0_41 = arith.constant 0 : index
    %39 = vector.load %arg2[%c2_38, %c2_39, %c0_40, %c0_41] : memref<3x3x128x128xbf16, #tpu.memory_space<vmem>>, vector<1x1x128x128xbf16>
    %40 = vector.shape_cast %39 : vector<1x1x128x128xbf16> to vector<128x128xbf16>
    %cst_42 = arith.constant dense<0.000000e+00> : vector<128x128xf32>
    %41 = tpu.matmul %0, %40, %cst_42 {dimension_numbers = #tpu.dot_dimension_numbers<[1], [0], [0], [1], [0, 0, 1, 1], [], []>} : vector<128x128xbf16>, vector<128x128xbf16>, vector<128x128xf32> -> vector<128x128xf32>
    %c110_i32 = arith.constant 110 : i32
    %42 = tpu.dynamic_rotate %41 by %c110_i32 dim 0 : vector<128x128xf32>, i32 -> vector<128x128xf32>
    %43 = arith.addf %38, %42 : vector<128x128xf32>
    %c0_i32 = arith.constant 0 : i32
    %44 = arith.cmpi eq, %arg0, %c0_i32 : i32
    %45 = arith.extui %44 : i1 to i32
    %c0_i32_43 = arith.constant 0 : i32
    %46 = arith.cmpi ne, %45, %c0_i32_43 : i32
    scf.if %46 {
      %c0_47 = arith.constant 0 : index
      %c0_48 = arith.constant 0 : index
      %53 = vector.load %arg5[%c0_47, %c0_48] : memref<128x128xf32, #tpu.memory_space<vmem>>, vector<128x128xf32>
      tpu.vector_store %arg5[%c0_47, %c0_48], %43 {strides = array<i32>} : memref<128x128xf32, #tpu.memory_space<vmem>>, vector<128x128xf32>,
    } else {
    }
    %c0_i32_44 = arith.constant 0 : i32
    %47 = arith.cmpi sgt, %arg0, %c0_i32_44 : i32
    %48 = arith.extui %47 : i1 to i32
    %c0_i32_45 = arith.constant 0 : i32
    %49 = arith.cmpi ne, %48, %c0_i32_45 : i32
    scf.if %49 {
      %c0_47 = arith.constant 0 : index
      %c0_48 = arith.constant 0 : index
      %53 = vector.load %arg5[%c0_47, %c0_48] : memref<128x128xf32, #tpu.memory_space<vmem>>, vector<128x128xf32>
      %54 = arith.addf %53, %43 : vector<128x128xf32>
      %c0_49 = arith.constant 0 : index
      %c0_50 = arith.constant 0 : index
      %55 = vector.load %arg5[%c0_49, %c0_50] : memref<128x128xf32, #tpu.memory_space<vmem>>, vector<128x128xf32>
      tpu.vector_store %arg5[%c0_49, %c0_50], %54 {strides = array<i32>} : memref<128x128xf32, #tpu.memory_space<vmem>>, vector<128x128xf32>,
    } else {
    }
    %c1_i32 = arith.constant 1 : i32
    %50 = arith.cmpi eq, %arg0, %c1_i32 : i32
    %51 = arith.extui %50 : i1 to i32
    %c0_i32_46 = arith.constant 0 : i32
    %52 = arith.cmpi ne, %51, %c0_i32_46 : i32
    scf.if %52 {
      %c0_47 = arith.constant 0 : index
      %c0_48 = arith.constant 0 : index
      %53 = vector.load %arg5[%c0_47, %c0_48] : memref<128x128xf32, #tpu.memory_space<vmem>>, vector<128x128xf32>
      %c0_49 = arith.constant 0 : index
      %c0_50 = arith.constant 0 : index
      %54 = vector.load %arg3[%c0_49, %c0_50] : memref<1x128xf32, #tpu.memory_space<vmem>>, vector<1x128xf32>
      %55 = vector.broadcast %54 : vector<1x128xf32> to vector<128x128xf32>
      %56 = arith.addf %53, %55 : vector<128x128xf32>
      %cst_51 = arith.constant 0.000000e+00 : f32
      %57 = vector.broadcast %cst_51 : f32 to vector<128x128xf32>
      %58 = arith.maximumf %56, %57 : vector<128x128xf32>
      %59 = arith.truncf %58 : vector<128x128xf32> to vector<128x128xbf16>
      %c0_52 = arith.constant 0 : index
      %c0_53 = arith.constant 0 : index
      %60 = vector.load %arg4[%c0_52, %c0_53] : memref<128x128xbf16, #tpu.memory_space<vmem>>, vector<128x128xbf16>
      tpu.vector_store %arg4[%c0_52, %c0_53], %59 {strides = array<i32>} : memref<128x128xbf16, #tpu.memory_space<vmem>>, vector<128x128xbf16>,
    } else {
    }
    return
  }
  func.func @transform_0(%arg0: i32) -> (i32, i32) {
    %c0_i32 = arith.constant 0 : i32
    %c0_i32_0 = arith.constant 0 : i32
    return %c0_i32, %arg0 : i32, i32
  }
  func.func @transform_1(%arg0: i32) -> (i32, i32, i32, i32) {
    %c0_i32 = arith.constant 0 : i32
    %c0_i32_0 = arith.constant 0 : i32
    %c0_i32_1 = arith.constant 0 : i32
    %c0_i32_2 = arith.constant 0 : i32
    return %c0_i32, %c0_i32_0, %arg0, %c0_i32_1 : i32, i32, i32, i32
  }
  func.func @transform_2(%arg0: i32) -> (i32, i32) {
    %c0_i32 = arith.constant 0 : i32
    %c0_i32_0 = arith.constant 0 : i32
    %c0_i32_1 = arith.constant 0 : i32
    return %c0_i32, %c0_i32_0 : i32, i32
  }
  func.func @transform_3(%arg0: i32) -> (i32, i32) {
    %c0_i32 = arith.constant 0 : i32
    %c0_i32_0 = arith.constant 0 : i32
    %c0_i32_1 = arith.constant 0 : i32
    return %c0_i32, %c0_i32_0 : i32, i32
  }
}

</mosaic_0001>

<bundles_post_ra>
// kernel: tpu_custom_call.1
= control target key start
LH: loop header
LB: loop body
LE: loop exit
PB: predicated region body
PF: predicated region fallthrough
CT: control target
= control target key end

     0   :  { %8 = vsyncpa [#allocation4], 0  ;;  %s4159_s0 = inlined_call_operand.hbm [shape: bf16[128,256], index: 0, kind: input, shape index: {}]   ;;  %s4160_s1 = inlined_call_operand.hbm [shape: bf16[3,3,256,128], index: 1, kind: input, shape index: {}]   ;;  %s4161_s2 = inlined_call_operand.vmem [shape: f32[1,128], index: 2, kind: input, shape index: {}]   ;;  %s4162_s3 = inlined_call_operand.hbm [shape: bf16[128,128], index: 3, kind: output, shape index: {}]  }
   0x1   :  { %10 = vsyncpa [#allocation4 + $0x1], 0 }
   0x2   :  { %11 = vsyncpa [#allocation7], 0 }
   0x3   :  { %13 = vsyncpa [#allocation7 + $0x1], 0 }
   0x4   :  { %14 = vsyncpa [#allocation5], 0  ;;  %s3394_s12 = smov 0   ;;  %s3396_s13 = smov 0  }
   0x5   :  { %s3398_s14 = smov 0   ;;  %s3400_s15 = smov 0  }
   0x6 LB: > { %s3413_s16 = sadd.s32 4294967295, %s3359_s15   ;;  %s3416_s17 = sadd.s32 1, %s3359_s15   ;;  %s3359_s15 = sphi %s3400_s15, %s4168_s15   ;;  %s3355_s14 = sphi %s3398_s14, %s4167_s14   ;;  %s3351_s13 = sphi %s3396_s13, %s4166_s13   ;;  %s3347_s12 = sphi %s3394_s12, %s4165_s12  }
   0x7   : > { %s24_s18 = ssub.s32 %s3359_s15, %s3416_s17  ;;  %s27_s19 = sadd.s32 1, %s3355_s14 }
   0x8   : > { %p25_p0 = scmp.eq.s32.totalorder %s24_s18, 0  ;;  %p34_p1 = scmp.ne.s32.totalorder %s3355_s14, %s3351_s13 }
   0x9   : > { %p35_p2 = scmp.eq.s32.totalorder %s3359_s15, 0  ;;  %p40_p3 = scmp.ne.s32.totalorder %s3351_s13, %s3347_s12 }
   0xa   : > { %s3426_s20 = scalar_select %p25_p0, %s3355_s14, %s27_s19  }
   0xb   : > { %p3428_p4 = por %p35_p2, %p34_p1  ;;  %p41_p5 = scmp.eq.s32.totalorder %s3413_s16, 0 }
   0xc   : > { %p2367_p7 = scmp.ge.s32.totalorder %s3359_s15, 2 }
   0xd   : > { %p3433_p6 = por %p41_p5, %p40_p3  ;;  %s3439_s23 = sand.u32 (!%p2367_p7), 1, %s3355_s14  }
   0xe   : > { %131 = sbr.rel (%p2367_p7) target bundleno = 54 (0x36), region = 20  ;;  %s2369_s24 = sshll.u32 (!%p2367_p7), %s3359_s15, 6 }
   0xf   : > { %s2368_s25 = sshll.u32 (!%p2367_p7), %s3439_s23, 6  ;;  %s3446_s28 = scalar_lea.hbm (!%p2367_p7), %s4159_s0, %s2369_s24 }
  0x10   : > { %s139_s29 = scalar_lea.vmem (!%p2367_p7), [#allocation3], %s2368_s25  ;;  %s136_s4 = scalar_lea.sflag (!%p2367_p7), [#allocation4], %s3439_s23 }
  0x11   : > { %s145_s30 = sshll.u32 (!%p2367_p7), %s139_s29, 4  ;;  %s3263_s5 = scalar_lea.hbm (!%p2367_p7), %s3446_s28, 1024  ;;  %s3448_s30 = int_to_ptr.vmem [resolvable:$true] %s145_s30 }
  0x12   : > { %p3264_p8 = scmp.ne.s32.totalorder (!%p2367_p7), %s3446_s28, %s3263_s5  ;;  %s3267_s8 = scalar_lea.hbm (!%p2367_p7), %s4159_s0, 2048 }
  0x13   : > { %p3268_p11 = scmp.lt.u32.totalorder (!%p2367_p7), %s3446_s28, %s4159_s0  ;;  %p3269_p12 = scmp.lt.u32.totalorder (!%p2367_p7), %s3267_s8, %s3263_s5 }
  0x14   : > { %p3265_p9 = pnand (!%p2367_p7), %p3264_p8, %p3428_p4  ;;  %p3271_p0 = scmp.lt.u32.totalorder (!%p2367_p7), %s3263_s5, %s3446_s28 }
  0x15   : > { %p3270_p13 = por %p3269_p12, %p3268_p11 }
  0x16   : > { %p3266_p10 = pneg %p3265_p9 }
  0x17   : > { %p3272_p1 = por %p3271_p0, %p3270_p13 }
  0x19   : > { %p3273_p2 = pnand %p3272_p1, %p3266_p10 }
  0x1b   : > { %3276 = shalt.err (!%p3273_p2)
}
  0x1c   : > { %s3277_s11 = scalar_lea.vmem %s3448_s30, 1024  ;;  %s3361_s12 = smov [#allocation3]  }
  0x1d   : > { %p3278_p3 = scmp.ne.s32.totalorder %s3448_s30, %s3277_s11  ;;  %s3281_s18 = sshll.u32 %s3361_s12, 4  ;;  %s3282_s18 = int_to_ptr.vmem [resolvable:$false] %s3281_s18 }
  0x1e   : > { %s3283_s19 = scalar_lea.vmem %s3282_s18, 2048  ;;  %p3284_p8 = scmp.lt.s32.totalorder %s3448_s30, %s3282_s18 }
  0x1f   : > { %p3279_p5 = pnand %p3278_p3, %p3428_p4  ;;  %p3285_p9 = scmp.lt.s32.totalorder %s3283_s19, %s3277_s11 }
  0x21   : > { %p3280_p7 = pneg %p3279_p5  ;;  %p3286_p11 = por %p3285_p9, %p3284_p8 }
  0x23   : > { %p3287_p12 = pnand %p3286_p11, %p3280_p7 }
  0x25   : > { %3290 = shalt.err (!%p3287_p12)
}
  0x26   : > { %s3362_s24 = smov 128   ;;  %s3363_s25 = smov 64  }
  0x27   : > { %s3364_s26 = smov 4  }
  0x28   : > { %3122 = dma.hbm_to_vmem [thread:$0]  (%p3428_p4), %s3446_s28, 1024, %s3448_s30, %s136_s4, %s3362_s24, %s3363_s25, %s3364_s26  }
  0x29   : > { %s3120_s27 = smul.u32 576, %s3439_s23  ;;  %s2608_s29 = sshll.u32 %s3359_s15, 10 }
  0x2a   : > { %s3123_s5 = scalar_select %p3428_p4, [#allocation0], [#allocation11] }
  0x2b   : > { %s165_s8 = scalar_lea.hbm %s4160_s1, %s2608_s29  ;;  %s3365_s9 = smov 2048  }
  0x2c   : > { %3124 = sst [smem:[#allocation10]] (%p3428_p4), %s3365_s9  ;;  %s159_s30 = scalar_lea.vmem [#allocation6], %s3120_s27 }
  0x2d   : > { %s170_s28 = sld [smem:[%s3123_s5]]   ;;  %s178_s4 = sshll.u32 %s159_s30, 4  ;;  %s179_s4 = int_to_ptr.vmem [resolvable:$true] %s178_s4 }
  0x2e   : > { %s3366_s10 = smov 1024   ;;  %s3367_s11 = smov 16  }
  0x2f   : > { %3125 = sst [smem:[#allocation10 + $0x1]] (%p3428_p4), %s3366_s10  ;;  %s3368_s12 = smov 64  }
  0x30   : > { %3126 = sst [smem:[#allocation10 + $0x2]] (%p3428_p4), %s3367_s11  ;;  %s3369_s19 = smov 4  }
  0x31   : > { %3127 = sst [smem:[#allocation10 + $0x3]] (%p3428_p4), %s3368_s12  ;;  %s156_s25 = scalar_lea.sflag [#allocation7], %s3439_s23 }
  0x32   : > { %3128 = sst [smem:[#allocation10 + $0x4]] (%p3428_p4), %s3368_s12  ;;  %s3370_s26 = smov [#allocation9]  }
  0x33   : > { %s2372_s18 = sshll.u32 %s170_s28, 26  ;;  %3129 = sst [smem:[#allocation10 + $0x5]] (%p3428_p4), %s3369_s19 }
  0x34   : > { %s2373_s24 = sadd.s32 134217728, %s2372_s18 }
  0x35   : > { %3130 = dma.general (%p3428_p4), %s165_s8, 9216, %s179_s4, %s156_s25, %s3370_s26, [#allocation10], %s2373_s24, 0  }
  0x36 PF: > { %p2374_p10 = scmp.ge.s32.totalorder %s3359_s15, 1  ;;  %p199_p13 = scmp.lt.s32.totalorder %s3359_s15, 3 }
  0x38   : > { %p200_p0 = pnand %p2374_p10, %p199_p13 }
  0x39   : > { %s205_s27 = sand.u32 (!%p200_p0), 1, %s3351_s13  }
  0x3a   : > { %203 = sbr.rel (%p200_p0) target bundleno = 521 (0x209), region = 32  ;;  %s2375_s29 = sshll.u32 (!%p200_p0), %s205_s27, 6 }
  0x3b   : > { %s206_s5 = scalar_lea.sflag (!%p200_p0), [#allocation4], %s205_s27  ;;  %s3499_s6 = scalar_lea.vmem (!%p200_p0), [#allocation3], %s2375_s29 }
  0x41   : > { %3334 = dma.done.wait (%p3433_p6), %s206_s5, 1024  }
  0x42   : > { %3336 = vsyncadd (%p3433_p6), %s206_s5, 4294966272  ;;  %s3121_s21 = smul.u32 576, %s205_s27  ;;  %s215_s23 = scalar_lea.sflag [#allocation7], %s205_s27 }
  0x44   : > { %s3505_s7 = scalar_lea.vmem [#allocation6], %s3121_s21 }
  0x45   : > { %3338 = dma.done.wait (%p3433_p6), %s215_s23, 9216  }
  0x46   : > { %3340 = vsyncadd (%p3433_p6), %s215_s23, 4294958080  ;;  %v3183_v0 = vld [vmem:[%s3505_s7 + $0x40] sm:$0xff]   ;;  %v3185_v2 = vld [vmem:[%s3505_s7 + $0x48] sm:$0xff]   ;;  %p2584_p4 = scmp.ne.s32.totalorder %s3413_s16, 0 }
  0x47   : > { %v3184_v1 = vld [vmem:[%s3505_s7] sm:$0xff]   ;;  %2816 = vmatprep.subr.bf16.mxu0 %v3183_v0  ;;  %v3186_v3 = vld [vmem:[%s3505_s7 + $0x8] sm:$0xff]   ;;  %v3187_v4 = vld [vmem:[%s3505_s7 + $0x50] sm:$0xff]  }
  0x48   : > { %2848 = vmatprep.subr.bf16.mxu1 %v3184_v1  ;;  %2817 = vmatpush3.bf16.msra.mxu0 %v3183_v0  ;;  %v3188_v5 = vld [vmem:[%s3505_s7 + $0x10] sm:$0xff]   ;;  %v3189_v6 = vld [vmem:[%s3505_s7 + $0x58] sm:$0xff]   ;;  %v3191_v8 = vld [vmem:[%s3505_s7 + $0x60] sm:$0xff]  }
  0x49   : > { %2849 = vmatpush3.bf16.msra.mxu1 %v3184_v1  ;;  %2818 = vmatprep.subr.bf16.mxu0 %v3185_v2  ;;  %v3190_v7 = vld [vmem:[%s3505_s7 + $0x18] sm:$0xff]   ;;  %v3192_v9 = vld [vmem:[%s3505_s7 + $0x20] sm:$0xff]   ;;  %v3193_v10 = vld [vmem:[%s3505_s7 + $0x68] sm:$0xff]  }
  0x4a   : > { %2850 = vmatprep.subr.bf16.mxu1 %v3186_v3  ;;  %v3523_v11 = vld [vmem:[%s3499_s6] sm:$0xff]   ;;  %v3194_v12 = vld [vmem:[%s3505_s7 + $0x28] sm:$0xff]   ;;  %v3195_v13 = vld [vmem:[%s3505_s7 + $0x70] sm:$0xff]  }
  0x4b   : > { %2832 = vmatprep.mubr.bf16.mxu0 %v3523_v11  ;;  %2864 = vmatprep.mubr.bf16.mxu1 %v3523_v11  ;;  %v3196_v14 = vld [vmem:[%s3505_s7 + $0x30] sm:$0xff]   ;;  %v3197_v15 = vld [vmem:[%s3505_s7 + $0x78] sm:$0xff]   ;;  %v3201_v17 = vld [vmem:[%s3505_s7 + $0x80] sm:$0xff]  }
  0x4c   : > { %2819 = vmatpush3.bf16.msra.mxu0 %v3185_v2  ;;  %v3198_v16 = vld [vmem:[%s3505_s7 + $0x38] sm:$0xff]   ;;  %v3202_v18 = vld [vmem:[%s3505_s7 + $0xc0] sm:$0xff]   ;;  %v3535_v19 = vld [vmem:[%s3499_s6 + $0x8] sm:$0xff]  }
  0x4d   : > { %2851 = vmatpush3.bf16.msra.mxu1 %v3186_v3  ;;  %2820 = vmatprep.subr.bf16.mxu0 %v3187_v4  ;;  %v3203_v20 = vld [vmem:[%s3505_s7 + $0x88] sm:$0xff]   ;;  %v3540_v22 = vld [vmem:[%s3499_s6 + $0x10] sm:$0xff]   ;;  %v3549_v25 = vld [vmem:[%s3499_s6 + $0x18] sm:$0xff]  }
  0x4e   : > { %2852 = vmatprep.subr.bf16.mxu1 %v3188_v5  ;;  %v3204_v21 = vld [vmem:[%s3505_s7 + $0xc8] sm:$0xff]   ;;  %v3207_v23 = vld [vmem:[%s3505_s7 + $0x90] sm:$0xff]   ;;  %v3209_v26 = vld [vmem:[%s3505_s7 + $0x98] sm:$0xff]  }
  0x4f   : > { %v3208_v24 = vld [vmem:[%s3505_s7 + $0xd0] sm:$0xff]   ;;  %v3210_v27 = vld [vmem:[%s3505_s7 + $0xd8] sm:$0xff]   ;;  %v3554_v28 = vld [vmem:[%s3499_s6 + $0x20] sm:$0xff]  }
  0x50   : > { %2821 = vmatpush3.bf16.msra.mxu0 %v3187_v4  ;;  %v3213_v29 = vld [vmem:[%s3505_s7 + $0xa0] sm:$0xff]   ;;  %v3563_v31 = vld [vmem:[%s3499_s6 + $0x28] sm:$0xff]   ;;  %v3568_v34 = vld [vmem:[%s3499_s6 + $0x30] sm:$0xff]  }
  0x51   : > { %2853 = vmatpush3.bf16.msra.mxu1 %v3188_v5  ;;  %2822 = vmatprep.subr.bf16.mxu0 %v3189_v6  ;;  %v3214_v30 = vld [vmem:[%s3505_s7 + $0xe0] sm:$0xff]   ;;  %v3215_v32 = vld [vmem:[%s3505_s7 + $0xa8] sm:$0xff]   ;;  %v3219_v35 = vld [vmem:[%s3505_s7 + $0xb0] sm:$0xff]  }
  0x52   : > { %2854 = vmatprep.subr.bf16.mxu1 %v3190_v7  ;;  %v3216_v33 = vld [vmem:[%s3505_s7 + $0xe8] sm:$0xff]   ;;  %v3220_v36 = vld [vmem:[%s3505_s7 + $0xf0] sm:$0xff]   ;;  %v3577_v37 = vld [vmem:[%s3499_s6 + $0x38] sm:$0xff]  }
  0x53   : > { %v3221_v38 = vld [vmem:[%s3505_s7 + $0xb8] sm:$0xff]   ;;  %v3223_v40 = vld [vmem:[%s3505_s7 + $0x100] sm:$0xff]   ;;  %v3225_v42 = vld [vmem:[%s3505_s7 + $0x108] sm:$0xff]  }
  0x54   : > { %2823 = vmatpush3.bf16.msra.mxu0 %v3189_v6  ;;  %v3222_v39 = vld [vmem:[%s3505_s7 + $0xf8] sm:$0xff]   ;;  %v3224_v41 = vld [vmem:[%s3505_s7 + $0x140] sm:$0xff]   ;;  %v3226_v43 = vld [vmem:[%s3505_s7 + $0x148] sm:$0xff]  }
  0x55   : > { %2855 = vmatpush3.bf16.msra.mxu1 %v3190_v7  ;;  %2824 = vmatprep.subr.bf16.mxu0 %v3191_v8  ;;  %v3227_v44 = vld [vmem:[%s3505_s7 + $0x110] sm:$0xff]   ;;  %v3229_v46 = vld [vmem:[%s3505_s7 + $0x118] sm:$0xff]   ;;  %v3231_v48 = vld [vmem:[%s3505_s7 + $0x120] sm:$0xff]  }
  0x56   : > { %2856 = vmatprep.subr.bf16.mxu1 %v3192_v9  ;;  %v3228_v45 = vld [vmem:[%s3505_s7 + $0x150] sm:$0xff]   ;;  %v3230_v47 = vld [vmem:[%s3505_s7 + $0x158] sm:$0xff]   ;;  %v3232_v49 = vld [vmem:[%s3505_s7 + $0x160] sm:$0xff]  }
  0x57   : > { %v3233_v50 = vld [vmem:[%s3505_s7 + $0x128] sm:$0xff]   ;;  %v3235_v52 = vld [vmem:[%s3505_s7 + $0x130] sm:$0xff]   ;;  %v3237_v54 = vld [vmem:[%s3505_s7 + $0x138] sm:$0xff]  }
  0x58   : > { %2825 = vmatpush3.bf16.msra.mxu0 %v3191_v8  ;;  %v3234_v51 = vld [vmem:[%s3505_s7 + $0x168] sm:$0xff]   ;;  %v3236_v53 = vld [vmem:[%s3505_s7 + $0x170] sm:$0xff]   ;;  %v3238_v55 = vld [vmem:[%s3505_s7 + $0x178] sm:$0xff]  }
  0x59   : > { %2857 = vmatpush3.bf16.msra.mxu1 %v3192_v9  ;;  %2826 = vmatprep.subr.bf16.mxu0 %v3193_v10  ;;  %v3239_v56 = vld [vmem:[%s3505_s7 + $0x180] sm:$0xff]   ;;  %v3241_v58 = vld [vmem:[%s3505_s7 + $0x188] sm:$0xff]   ;;  %v3243_v60 = vld [vmem:[%s3505_s7 + $0x190] sm:$0xff]  }
  0x5a   : > { %2858 = vmatprep.subr.bf16.mxu1 %v3194_v12  ;;  %v3240_v57 = vld [vmem:[%s3505_s7 + $0x1c0] sm:$0xff]   ;;  %v3242_v59 = vld [vmem:[%s3505_s7 + $0x1c8] sm:$0xff]   ;;  %v3244_v61 = vld [vmem:[%s3505_s7 + $0x1d0] sm:$0xff]  }
  0x5b   : > { %v3245_v62 = vld [vmem:[%s3505_s7 + $0x198] sm:$0xff]   ;;  %v3247_v0 = vld [vmem:[%s3505_s7 + $0x1a0] sm:$0xff]   ;;  %v3249_v2 = vld [vmem:[%s3505_s7 + $0x1a8] sm:$0xff]  }
  0x5c   : > { %2827 = vmatpush3.bf16.msra.mxu0 %v3193_v10  ;;  %v3246_v63 = vld [vmem:[%s3505_s7 + $0x1d8] sm:$0xff]   ;;  %v3248_v1 = vld [vmem:[%s3505_s7 + $0x1e0] sm:$0xff]   ;;  %v3250_v3 = vld [vmem:[%s3505_s7 + $0x1e8] sm:$0xff]  }
  0x5d   : > { %2859 = vmatpush3.bf16.msra.mxu1 %v3194_v12  ;;  %2828 = vmatprep.subr.bf16.mxu0 %v3195_v13  ;;  %v3251_v4 = vld [vmem:[%s3505_s7 + $0x1b0] sm:$0xff]   ;;  %v3253_v6 = vld [vmem:[%s3505_s7 + $0x1b8] sm:$0xff]   ;;  %v3255_v8 = vld [vmem:[%s3505_s7 + $0x200] sm:$0xff]  }
  0x5e   : > { %2860 = vmatprep.subr.bf16.mxu1 %v3196_v14  ;;  %v3252_v5 = vld [vmem:[%s3505_s7 + $0x1f0] sm:$0xff]   ;;  %v3254_v7 = vld [vmem:[%s3505_s7 + $0x1f8] sm:$0xff]   ;;  %v3256_v9 = vld [vmem:[%s3505_s7 + $0x208] sm:$0xff]  }
  0x5f   : > { %v3257_v10 = vld [vmem:[%s3505_s7 + $0x210] sm:$0xff]   ;;  %v3258_v12 = vld [vmem:[%s3505_s7 + $0x218] sm:$0xff]  }
  0x60   : > { %2829 = vmatpush3.bf16.msra.mxu0 %v3195_v13  ;;  %v3259_v13 = vld [vmem:[%s3505_s7 + $0x220] sm:$0xff]  }
  0x61   : > { %2861 = vmatpush3.bf16.msra.mxu1 %v3196_v14  ;;  %2830 = vmatprep.subr.bf16.mxu0 %v3197_v15  ;;  %v3260_v14 = vld [vmem:[%s3505_s7 + $0x228] sm:$0xff]  }
  0x62   : > { %2862 = vmatprep.subr.bf16.mxu1 %v3198_v16 }
  0x64   : > { %2831 = vmatpush3.bf16.msra.mxu0 %v3197_v15  ;;  %v3261_v15 = vld [vmem:[%s3505_s7 + $0x230] sm:$0xff]  }
  0x65   : > { %2863 = vmatpush3.bf16.msra.mxu1 %v3198_v16  ;;  %2880 = vmatprep.subr.bf16.mxu0 %v3201_v17  ;;  %v3262_v16 = vld [vmem:[%s3505_s7 + $0x238] sm:$0xff]  }
  0x66   : > { %2912 = vmatprep.subr.bf16.mxu1 %v3202_v18 }
  0x67   : > { %2833 = vmatmul.mubr.bf16.vlgmr.msra.gmra.mrb[0].mxu0 %v3535_v19 }
  0x68   : > { %2865 = vmatmul.mubr.bf16.vlgmr.msra.gmra.mrb[0].mxu1 %v3535_v19  ;;  %2881 = vmatpush3.bf16.msra.mxu0 %v3201_v17  ;;  %v501_v17 = vlaneseq }
  0x69   : > { %2913 = vmatpush3.bf16.msra.mxu1 %v3202_v18  ;;  %2882 = vmatprep.subr.bf16.mxu0 %v3203_v20 }
  0x6a   : > { %2914 = vmatprep.subr.bf16.mxu1 %v3204_v21  ;;  %2836 = vmatprep.mubr.bf16.mxu0 %v3540_v22  ;;  %v3679_v18 = vshrl.u32 %v501_v17, 7 }
  0x6b   : > { %2868 = vmatprep.mubr.bf16.mxu1 %v3540_v22 }
  0x6c   : > { %2883 = vmatpush3.bf16.msra.mxu0 %v3203_v20  ;;  %vm503_vm0 = vcmp.lt.s32.totalorder %v3679_v18, 7  ;;  %vm843_vm1 = vcmp.lt.s32.totalorder %v3679_v18, 6 }
  0x6d   : > { %2915 = vmatpush3.bf16.msra.mxu1 %v3204_v21  ;;  %2884 = vmatprep.subr.bf16.mxu0 %v3207_v23 }
  0x6e   : > { %2916 = vmatprep.subr.bf16.mxu1 %v3208_v24 }
  0x6f   : > { %2837 = vmatmul.mubr.bf16.gmra.mrb[4].mxu0 %v3549_v25 }
  0x70   : > { %2869 = vmatmul.mubr.bf16.gmra.mrb[4].mxu1 %v3549_v25  ;;  %2885 = vmatpush3.bf16.msra.mxu0 %v3207_v23 }
  0x71   : > { %2917 = vmatpush3.bf16.msra.mxu1 %v3208_v24  ;;  %2886 = vmatprep.subr.bf16.mxu0 %v3209_v26 }
  0x72   : > { %2918 = vmatprep.subr.bf16.mxu1 %v3210_v27  ;;  %2840 = vmatprep.mubr.bf16.mxu0 %v3554_v28 }
  0x73   : > { %2872 = vmatprep.mubr.bf16.mxu1 %v3554_v28 }
  0x74   : > { %2887 = vmatpush3.bf16.msra.mxu0 %v3209_v26 }
  0x75   : > { %2919 = vmatpush3.bf16.msra.mxu1 %v3210_v27  ;;  %2888 = vmatprep.subr.bf16.mxu0 %v3213_v29 }
  0x76   : > { %2920 = vmatprep.subr.bf16.mxu1 %v3214_v30 }
  0x77   : > { %2841 = vmatmul.mubr.bf16.gmra.mrb[8].mxu0 %v3563_v31 }
  0x78   : > { %2873 = vmatmul.mubr.bf16.gmra.mrb[8].mxu1 %v3563_v31  ;;  %2889 = vmatpush3.bf16.msra.mxu0 %v3213_v29 }
  0x79   : > { %2921 = vmatpush3.bf16.msra.mxu1 %v3214_v30  ;;  %2890 = vmatprep.subr.bf16.mxu0 %v3215_v32 }
  0x7a   : > { %2922 = vmatprep.subr.bf16.mxu1 %v3216_v33  ;;  %2844 = vmatprep.mubr.bf16.mxu0 %v3568_v34 }
  0x7b   : > { %2876 = vmatprep.mubr.bf16.mxu1 %v3568_v34 }
  0x7c   : > { %2891 = vmatpush3.bf16.msra.mxu0 %v3215_v32 }
  0x7d   : > { %2923 = vmatpush3.bf16.msra.mxu1 %v3216_v33  ;;  %2892 = vmatprep.subr.bf16.mxu0 %v3219_v35 }
  0x7e   : > { %2924 = vmatprep.subr.bf16.mxu1 %v3220_v36 }
  0x7f   : > { %2845 = vmatmul.mubr.bf16.gmra.mrb[12].mxu0 %v3577_v37 }
  0x80   : > { %2877 = vmatmul.mubr.bf16.gmra.mrb[12].mxu1 %v3577_v37  ;;  %2893 = vmatpush3.bf16.msra.mxu0 %v3219_v35 }
  0x81   : > { %2925 = vmatpush3.bf16.msra.mxu1 %v3220_v36  ;;  %2894 = vmatprep.subr.bf16.mxu0 %v3221_v38 }
  0x82   : > { %2926 = vmatprep.subr.bf16.mxu1 %v3222_v39  ;;  %2896 = vmatprep.mubr.bf16.mxu0 %v3523_v11 }
  0x83   : > { %2928 = vmatprep.mubr.bf16.mxu1 %v3523_v11 }
  0x84   : > { %2895 = vmatpush3.bf16.msra.mxu0 %v3221_v38 }
  0x85   : > { %2927 = vmatpush3.bf16.msra.mxu1 %v3222_v39  ;;  %2944 = vmatprep.subr.bf16.mxu0 %v3223_v40 }
  0x86   : > { %2976 = vmatprep.subr.bf16.mxu1 %v3224_v41 }
  0x87   : > { %2897 = vmatmul.mubr.bf16.vlgmr.msra.gmra.mrb[16].mxu0 %v3535_v19 }
  0x88   : > { %2929 = vmatmul.mubr.bf16.vlgmr.msra.gmra.mrb[16].mxu1 %v3535_v19  ;;  %2945 = vmatpush3.bf16.msra.mxu0 %v3223_v40 }
  0x89   : > { %2977 = vmatpush3.bf16.msra.mxu1 %v3224_v41  ;;  %2946 = vmatprep.subr.bf16.mxu0 %v3225_v42 }
  0x8a   : > { %2978 = vmatprep.subr.bf16.mxu1 %v3226_v43  ;;  %2900 = vmatprep.mubr.bf16.mxu0 %v3540_v22 }
  0x8b   : > { %2932 = vmatprep.mubr.bf16.mxu1 %v3540_v22 }
  0x8c   : > { %2947 = vmatpush3.bf16.msra.mxu0 %v3225_v42 }
  0x8d   : > { %2979 = vmatpush3.bf16.msra.mxu1 %v3226_v43  ;;  %2948 = vmatprep.subr.bf16.mxu0 %v3227_v44 }
  0x8e   : > { %2980 = vmatprep.subr.bf16.mxu1 %v3228_v45 }
  0x8f   : > { %2901 = vmatmul.mubr.bf16.gmra.mrb[20].mxu0 %v3549_v25 }
  0x90   : > { %2933 = vmatmul.mubr.bf16.gmra.mrb[20].mxu1 %v3549_v25  ;;  %2949 = vmatpush3.bf16.msra.mxu0 %v3227_v44 }
  0x91   : > { %2981 = vmatpush3.bf16.msra.mxu1 %v3228_v45  ;;  %2950 = vmatprep.subr.bf16.mxu0 %v3229_v46 }
  0x92   : > { %2982 = vmatprep.subr.bf16.mxu1 %v3230_v47  ;;  %2904 = vmatprep.mubr.bf16.mxu0 %v3554_v28 }
  0x93   : > { %2936 = vmatprep.mubr.bf16.mxu1 %v3554_v28 }
  0x94   : > { %2951 = vmatpush3.bf16.msra.mxu0 %v3229_v46 }
  0x95   : > { %2983 = vmatpush3.bf16.msra.mxu1 %v3230_v47  ;;  %2952 = vmatprep.subr.bf16.mxu0 %v3231_v48 }
  0x96   : > { %2984 = vmatprep.subr.bf16.mxu1 %v3232_v49 }
  0x97   : > { %2905 = vmatmul.mubr.bf16.gmra.mrb[24].mxu0 %v3563_v31 }
  0x98   : > { %2937 = vmatmul.mubr.bf16.gmra.mrb[24].mxu1 %v3563_v31  ;;  %2953 = vmatpush3.bf16.msra.mxu0 %v3231_v48 }
  0x99   : > { %2985 = vmatpush3.bf16.msra.mxu1 %v3232_v49  ;;  %2954 = vmatprep.subr.bf16.mxu0 %v3233_v50 }
  0x9a   : > { %2986 = vmatprep.subr.bf16.mxu1 %v3234_v51  ;;  %2908 = vmatprep.mubr.bf16.mxu0 %v3568_v34 }
  0x9b   : > { %2940 = vmatprep.mubr.bf16.mxu1 %v3568_v34 }
  0x9c   : > { %2955 = vmatpush3.bf16.msra.mxu0 %v3233_v50 }
  0x9d   : > { %2987 = vmatpush3.bf16.msra.mxu1 %v3234_v51  ;;  %2956 = vmatprep.subr.bf16.mxu0 %v3235_v52 }
  0x9e   : > { %2988 = vmatprep.subr.bf16.mxu1 %v3236_v53 }
  0x9f   : > { %2909 = vmatmul.mubr.bf16.gmra.mrb[28].mxu0 %v3577_v37 }
  0xa0   : > { %2941 = vmatmul.mubr.bf16.gmra.mrb[28].mxu1 %v3577_v37  ;;  %2957 = vmatpush3.bf16.msra.mxu0 %v3235_v52 }
  0xa1   : > { %2989 = vmatpush3.bf16.msra.mxu1 %v3236_v53  ;;  %2958 = vmatprep.subr.bf16.mxu0 %v3237_v54 }
  0xa2   : > { %2990 = vmatprep.subr.bf16.mxu1 %v3238_v55  ;;  %2960 = vmatprep.mubr.bf16.mxu0 %v3523_v11 }
  0xa3   : > { %2992 = vmatprep.mubr.bf16.mxu1 %v3523_v11 }
  0xa4   : > { %2959 = vmatpush3.bf16.msra.mxu0 %v3237_v54 }
  0xa5   : > { %2991 = vmatpush3.bf16.msra.mxu1 %v3238_v55  ;;  %3008 = vmatprep.subr.bf16.mxu0 %v3239_v56 }
  0xa6   : > { %3040 = vmatprep.subr.bf16.mxu1 %v3240_v57 }
  0xa7   : > { %2961 = vmatmul.mubr.bf16.vlgmr.msra.gmra.mrb[32].mxu0 %v3535_v19 }
  0xa8   : > { %2993 = vmatmul.mubr.bf16.vlgmr.msra.gmra.mrb[32].mxu1 %v3535_v19  ;;  %3009 = vmatpush3.bf16.msra.mxu0 %v3239_v56 }
  0xa9   : > { %3041 = vmatpush3.bf16.msra.mxu1 %v3240_v57  ;;  %3010 = vmatprep.subr.bf16.mxu0 %v3241_v58 }
  0xaa   : > { %3042 = vmatprep.subr.bf16.mxu1 %v3242_v59  ;;  %2964 = vmatprep.mubr.bf16.mxu0 %v3540_v22 }
  0xab   : > { %2996 = vmatprep.mubr.bf16.mxu1 %v3540_v22 }
  0xac   : > { %3011 = vmatpush3.bf16.msra.mxu0 %v3241_v58 }
  0xad   : > { %3043 = vmatpush3.bf16.msra.mxu1 %v3242_v59  ;;  %3012 = vmatprep.subr.bf16.mxu0 %v3243_v60 }
  0xae   : > { %3044 = vmatprep.subr.bf16.mxu1 %v3244_v61 }
  0xaf   : > { %2965 = vmatmul.mubr.bf16.gmra.mrb[36].mxu0 %v3549_v25 }
  0xb0   : > { %2997 = vmatmul.mubr.bf16.gmra.mrb[36].mxu1 %v3549_v25  ;;  %3013 = vmatpush3.bf16.msra.mxu0 %v3243_v60 }
  0xb1   : > { %3045 = vmatpush3.bf16.msra.mxu1 %v3244_v61  ;;  %3014 = vmatprep.subr.bf16.mxu0 %v3245_v62 }
  0xb2   : > { %3046 = vmatprep.subr.bf16.mxu1 %v3246_v63  ;;  %2968 = vmatprep.mubr.bf16.mxu0 %v3554_v28 }
  0xb3   : > { %3000 = vmatprep.mubr.bf16.mxu1 %v3554_v28 }
  0xb4   : > { %3015 = vmatpush3.bf16.msra.mxu0 %v3245_v62 }
  0xb5   : > { %3047 = vmatpush3.bf16.msra.mxu1 %v3246_v63  ;;  %3016 = vmatprep.subr.bf16.mxu0 %v3247_v0 }
  0xb6   : > { %3048 = vmatprep.subr.bf16.mxu1 %v3248_v1 }
  0xb7   : > { %2969 = vmatmul.mubr.bf16.gmra.mrb[40].mxu0 %v3563_v31 }
  0xb8   : > { %3001 = vmatmul.mubr.bf16.gmra.mrb[40].mxu1 %v3563_v31  ;;  %3017 = vmatpush3.bf16.msra.mxu0 %v3247_v0 }
  0xb9   : > { %3049 = vmatpush3.bf16.msra.mxu1 %v3248_v1  ;;  %3018 = vmatprep.subr.bf16.mxu0 %v3249_v2 }
  0xba   : > { %3050 = vmatprep.subr.bf16.mxu1 %v3250_v3  ;;  %2972 = vmatprep.mubr.bf16.mxu0 %v3568_v34 }
  0xbb   : > { %3004 = vmatprep.mubr.bf16.mxu1 %v3568_v34 }
  0xbc   : > { %3019 = vmatpush3.bf16.msra.mxu0 %v3249_v2 }
  0xbd   : > { %3051 = vmatpush3.bf16.msra.mxu1 %v3250_v3  ;;  %3020 = vmatprep.subr.bf16.mxu0 %v3251_v4 }
  0xbe   : > { %3052 = vmatprep.subr.bf16.mxu1 %v3252_v5 }
  0xbf   : > { %2973 = vmatmul.mubr.bf16.gmra.mrb[44].mxu0 %v3577_v37 }
  0xc0   : > { %3005 = vmatmul.mubr.bf16.gmra.mrb[44].mxu1 %v3577_v37  ;;  %3021 = vmatpush3.bf16.msra.mxu0 %v3251_v4 }
  0xc1   : > { %3053 = vmatpush3.bf16.msra.mxu1 %v3252_v5  ;;  %3022 = vmatprep.subr.bf16.mxu0 %v3253_v6 }
  0xc2   : > { %3054 = vmatprep.subr.bf16.mxu1 %v3254_v7  ;;  %3024 = vmatprep.mubr.bf16.mxu0 %v3523_v11 }
  0xc3   : > { %3056 = vmatprep.mubr.bf16.mxu1 %v3523_v11 }
  0xc4   : > { %3023 = vmatpush3.bf16.msra.mxu0 %v3253_v6 }
  0xc5   : > { %3055 = vmatpush3.bf16.msra.mxu1 %v3254_v7  ;;  %3072 = vmatprep.subr.bf16.mxu0 %v3255_v8 }
  0xc6   : > { %3104 = vmatprep.subr.bf16.mxu1 %v3255_v8 }
  0xc7   : > { %3025 = vmatmul.mubr.bf16.vlgmr.msra.gmra.mrb[48].mxu0 %v3535_v19 }
  0xc8   : > { %3057 = vmatmul.mubr.bf16.vlgmr.msra.gmra.mrb[48].mxu1 %v3535_v19  ;;  %3073 = vmatpush3.bf16.msra.mxu0 %v3255_v8 }
  0xc9   : > { %3112 = vmatpush3.bf16.msra.mxu1 %v3255_v8  ;;  %3074 = vmatprep.subr.bf16.mxu0 %v3256_v9 }
  0xca   : > { %3105 = vmatprep.subr.bf16.mxu1 %v3256_v9  ;;  %3028 = vmatprep.mubr.bf16.mxu0 %v3540_v22 }
  0xcb   : > { %3060 = vmatprep.mubr.bf16.mxu1 %v3540_v22 }
  0xcc   : > { %3075 = vmatpush3.bf16.msra.mxu0 %v3256_v9 }
  0xcd   : > { %3113 = vmatpush3.bf16.msra.mxu1 %v3256_v9  ;;  %3076 = vmatprep.subr.bf16.mxu0 %v3257_v10 }
  0xce   : > { %3106 = vmatprep.subr.bf16.mxu1 %v3257_v10 }
  0xcf   : > { %3029 = vmatmul.mubr.bf16.gmra.mrb[52].mxu0 %v3549_v25 }
  0xd0   : > { %3061 = vmatmul.mubr.bf16.gmra.mrb[52].mxu1 %v3549_v25  ;;  %3077 = vmatpush3.bf16.msra.mxu0 %v3257_v10 }
  0xd1   : > { %3114 = vmatpush3.bf16.msra.mxu1 %v3257_v10  ;;  %3078 = vmatprep.subr.bf16.mxu0 %v3258_v12 }
  0xd2   : > { %3107 = vmatprep.subr.bf16.mxu1 %v3258_v12  ;;  %3032 = vmatprep.mubr.bf16.mxu0 %v3554_v28 }
  0xd3   : > { %3064 = vmatprep.mubr.bf16.mxu1 %v3554_v28 }
  0xd4   : > { %3079 = vmatpush3.bf16.msra.mxu0 %v3258_v12 }
  0xd5   : > { %3115 = vmatpush3.bf16.msra.mxu1 %v3258_v12  ;;  %3080 = vmatprep.subr.bf16.mxu0 %v3259_v13 }
  0xd6   : > { %3108 = vmatprep.subr.bf16.mxu1 %v3259_v13 }
  0xd7   : > { %3033 = vmatmul.mubr.bf16.gmra.mrb[56].mxu0 %v3563_v31 }
  0xd8   : > { %3065 = vmatmul.mubr.bf16.gmra.mrb[56].mxu1 %v3563_v31  ;;  %3081 = vmatpush3.bf16.msra.mxu0 %v3259_v13 }
  0xd9   : > { %3116 = vmatpush3.bf16.msra.mxu1 %v3259_v13  ;;  %3082 = vmatprep.subr.bf16.mxu0 %v3260_v14 }
  0xda   : > { %3109 = vmatprep.subr.bf16.mxu1 %v3260_v14  ;;  %3036 = vmatprep.mubr.bf16.mxu0 %v3568_v34 }
  0xdb   : > { %3068 = vmatprep.mubr.bf16.mxu1 %v3568_v34 }
  0xdc   : > { %3083 = vmatpush3.bf16.msra.mxu0 %v3260_v14 }
  0xdd   : > { %3117 = vmatpush3.bf16.msra.mxu1 %v3260_v14  ;;  %3084 = vmatprep.subr.bf16.mxu0 %v3261_v15 }
  0xde   : > { %3110 = vmatprep.subr.bf16.mxu1 %v3261_v15 }
  0xdf   : > { %3037 = vmatmul.mubr.bf16.gmra.mrb[60].mxu0 %v3577_v37 }
  0xe0   : > { %3069 = vmatmul.mubr.bf16.gmra.mrb[60].mxu1 %v3577_v37  ;;  %3085 = vmatpush3.bf16.msra.mxu0 %v3261_v15 }
  0xe1   : > { %3118 = vmatpush3.bf16.msra.mxu1 %v3261_v15  ;;  %3086 = vmatprep.subr.bf16.mxu0 %v3262_v16 }
  0xe2   : > { %3111 = vmatprep.subr.bf16.mxu1 %v3262_v16  ;;  %3088 = vmatprep.mubr.bf16.mxu0 %v3523_v11 }
  0xe3   : > { %3096 = vmatprep.mubr.bf16.mxu1 %v3554_v28 }
  0xe4   : > { %3087 = vmatpush3.bf16.msra.mxu0 %v3262_v16 }
  0xe5   : > { %3119 = vmatpush3.bf16.msra.mxu1 %v3262_v16 }
  0xe7   : > { %3089 = vmatmul.mubr.bf16.vlgmr.msra.gmra.mrb[64].mxu0 %v3535_v19 }
  0xe8   : > { %3097 = vmatmul.mubr.bf16.vlgmr.msra.gmra.mrb[64].mxu1 %v3563_v31  ;;  %3092 = vmatprep.mubr.bf16.mxu0 %v3540_v22 }
  0xe9   : > { %3100 = vmatprep.mubr.bf16.mxu1 %v3568_v34 }
  0xef   : > { %3093 = vmatmul.mubr.bf16.gmra.mrb[68].mxu0 %v3549_v25 }
  0xf0   : > { %3101 = vmatmul.mubr.bf16.gmra.mrb[68].mxu1 %v3577_v37 }
 0x13a   : > { %v2834_v11 = vpop.f32.mrb[0].mxu0 }
 0x13b   : > { %v2866_v20 = vpop.f32.mrb[0].mxu1  ;;  %v3681_v21 = vpop.f32.mrb[1].mxu0  ;;  %v487_v19 = vrot.slane %v2834_v11, 1 }
 0x13c   : > { %v602_v23 = vpop.f32.mrb[1].mxu1  ;;  %v2835_v24 = vpop.f32.mrb[2].mxu0  ;;  %v485_v28 = vrot.slane %v3681_v21, 1 }
 0x13d   : > { %v488_v26 = vrot.slane %v2835_v24, 1  ;;  %v2867_v22 = vpop.f32.mrb[2].mxu1  ;;  %v425_v27 = vpop.f32.mrb[3].mxu0 }
 0x13e   : > { %v486_v25 = vrot.slane %v425_v27, 1  ;;  %v605_v29 = vpop.f32.mrb[3].mxu1 }
 0x13f   : > { %v516_v30 = vsel %vm503_vm0, %v487_v19, %v488_v26 }
 0x140   : > { %v518_v31 = vsel %vm503_vm0, %v485_v28, %v486_v25  ;;  %v517_v32 = vsel %vm503_vm0, %v486_v25, %v487_v19  ;;  %v3693_v33 = vadd.f32 %v2866_v20, %v516_v30 }
 0x141   : > { %v3695_v34 = vadd.f32 %v605_v29, %v517_v32  ;;  %v3697_v35 = vadd.f32 %v602_v23, %v518_v31 }
 0x142   : > { %v2838_v36 = vpop.f32.mrb[4].mxu0 }
 0x143   : > { %v2870_v37 = vpop.f32.mrb[4].mxu1  ;;  %v438_v38 = vpop.f32.mrb[5].mxu0  ;;  %v491_v42 = vrot.slane %v2838_v36, 1 }
 0x144   : > { %v489_v39 = vrot.slane %v438_v38, 1  ;;  %v618_v40 = vpop.f32.mrb[5].mxu1  ;;  %v2839_v41 = vpop.f32.mrb[6].mxu0 }
 0x145   : > { %v492_v43 = vrot.slane %v2839_v41, 1  ;;  %v2871_v44 = vpop.f32.mrb[6].mxu1  ;;  %v441_v45 = vpop.f32.mrb[7].mxu0 }
 0x146   : > { %v515_v46 = vsel %vm503_vm0, %v488_v26, %v489_v39  ;;  %v490_v47 = vrot.slane %v441_v45, 1  ;;  %v621_v48 = vpop.f32.mrb[7].mxu1 }
 0x147   : > { %v512_v49 = vsel %vm503_vm0, %v491_v42, %v492_v43  ;;  %v3703_v50 = vadd.f32 %v2867_v22, %v515_v46 }
 0x148   : > { %v514_v51 = vsel %vm503_vm0, %v489_v39, %v490_v47  ;;  %v513_v52 = vsel %vm503_vm0, %v490_v47, %v491_v42  ;;  %v3709_v53 = vadd.f32 %v2870_v37, %v512_v49 }
 0x149   : > { %v3711_v54 = vadd.f32 %v621_v48, %v513_v52  ;;  %v3713_v55 = vadd.f32 %v618_v40, %v514_v51 }
 0x14a   : > { %v2842_v56 = vpop.f32.mrb[8].mxu0 }
 0x14b   : > { %v2874_v57 = vpop.f32.mrb[8].mxu1  ;;  %v454_v58 = vpop.f32.mrb[9].mxu0  ;;  %v495_v62 = vrot.slane %v2842_v56, 1 }
 0x14c   : > { %v493_v59 = vrot.slane %v454_v58, 1  ;;  %v634_v60 = vpop.f32.mrb[9].mxu1  ;;  %v2843_v61 = vpop.f32.mrb[10].mxu0 }
 0x14d   : > { %v496_v63 = vrot.slane %v2843_v61, 1  ;;  %v2875_v0 = vpop.f32.mrb[10].mxu1  ;;  %v457_v1 = vpop.f32.mrb[11].mxu0 }
 0x14e   : > { %v511_v2 = vsel %vm503_vm0, %v492_v43, %v493_v59  ;;  %v494_v3 = vrot.slane %v457_v1, 1  ;;  %v637_v4 = vpop.f32.mrb[11].mxu1 }
 0x14f   : > { %v508_v5 = vsel %vm503_vm0, %v495_v62, %v496_v63  ;;  %v3719_v6 = vadd.f32 %v2871_v44, %v511_v2 }
 0x150   : > { %v510_v7 = vsel %vm503_vm0, %v493_v59, %v494_v3  ;;  %v509_v8 = vsel %vm503_vm0, %v494_v3, %v495_v62  ;;  %v3725_v9 = vadd.f32 %v2874_v57, %v508_v5 }
 0x151   : > { %v3727_v10 = vadd.f32 %v637_v4, %v509_v8  ;;  %v3729_v12 = vadd.f32 %v634_v60, %v510_v7 }
 0x152   : > { %v2846_v13 = vpop.f32.mrb[12].mxu0 }
 0x153   : > { %v2878_v14 = vpop.f32.mrb[12].mxu1  ;;  %v470_v15 = vpop.f32.mrb[13].mxu0  ;;  %v499_v20 = vrot.slane %v2846_v13, 1 }
 0x154   : > { %v497_v16 = vrot.slane %v470_v15, 1  ;;  %v650_v17 = vpop.f32.mrb[13].mxu1  ;;  %v2847_v11 = vpop.f32.mrb[14].mxu0 }
 0x155   : > { %v500_v23 = vrot.slane %v2847_v11, 1  ;;  %v2879_v24 = vpop.f32.mrb[14].mxu1  ;;  %v473_v19 = vpop.f32.mrb[15].mxu0 }
 0x156   : > { %v507_v26 = vsel %vm503_vm0, %v496_v63, %v497_v16  ;;  %v498_v22 = vrot.slane %v473_v19, 1  ;;  %v653_v27 = vpop.f32.mrb[15].mxu1 }
 0x157   : > { %v504_v25 = vsel %vm503_vm0, %v499_v20, %v500_v23  ;;  %v519_v29 = vsel %vm503_vm0, %v500_v23, %v485_v28  ;;  %v3739_v30 = vadd.f32 %v2875_v0, %v507_v26 }
 0x158   : > { %v3741_v31 = vadd.f32 %v2879_v24, %v519_v29  ;;  %v506_v32 = vsel %vm503_vm0, %v497_v16, %v498_v22  ;;  %v505_v36 = vsel %vm503_vm0, %v498_v22, %v499_v20  ;;  %v3747_v37 = vadd.f32 %v2878_v14, %v504_v25 }
 0x159   : > { %v3749_v38 = vadd.f32 %v653_v27, %v505_v36  ;;  %v3751_v39 = vadd.f32 %v650_v17, %v506_v32 }
 0x15a   : > { %v2898_v21 = vpop.f32.mrb[16].mxu0 }
 0x15b   : > { %v2930_v40 = vpop.f32.mrb[16].mxu1  ;;  %v3753_v41 = vpop.f32.mrb[17].mxu0  ;;  %v829_v43 = vrot.slane %v2898_v21, 2 }
 0x15c   : > { %v3755_v28 = vpop.f32.mrb[17].mxu1  ;;  %v2899_v42 = vpop.f32.mrb[18].mxu0  ;;  %v827_v47 = vrot.slane %v3753_v41, 2 }
 0x15d   : > { %v830_v44 = vrot.slane %v2899_v42, 2  ;;  %v2931_v45 = vpop.f32.mrb[18].mxu1  ;;  %v767_v46 = vpop.f32.mrb[19].mxu0 }
 0x15e   : > { %v828_v48 = vrot.slane %v767_v46, 2  ;;  %v978_v49 = vpop.f32.mrb[19].mxu1 }
 0x15f   : > { %v856_v51 = vsel %vm843_vm1, %v829_v43, %v830_v44 }
 0x160   : > { %v862_v52 = vadd.f32 %v856_v51, %v3693_v33  ;;  %v857_v56 = vsel %vm843_vm1, %v828_v48, %v829_v43  ;;  %v858_v57 = vsel %vm843_vm1, %v827_v47, %v828_v48 }
 0x161   : > { %v861_v58 = vadd.f32 %v857_v56, %v3695_v34  ;;  %v860_v59 = vadd.f32 %v858_v57, %v3697_v35 }
 0x162   : > { %v3770_v60 = vadd.f32 %v2931_v45, %v862_v52  ;;  %v2902_v61 = vpop.f32.mrb[20].mxu0 }
 0x163   : > { %v3772_v62 = vadd.f32 %v978_v49, %v860_v59  ;;  %v2934_v63 = vpop.f32.mrb[20].mxu1  ;;  %v780_v0 = vpop.f32.mrb[21].mxu0  ;;  %v3774_v33 = vadd.f32 %v2930_v40, %v861_v58  ;;  %v833_v4 = vrot.slane %v2902_v61, 2 }
 0x164   : > { %v831_v1 = vrot.slane %v780_v0, 2  ;;  %v991_v2 = vpop.f32.mrb[21].mxu1  ;;  %v2903_v3 = vpop.f32.mrb[22].mxu0 }
 0x165   : > { %v834_v5 = vrot.slane %v2903_v3, 2  ;;  %v2935_v7 = vpop.f32.mrb[22].mxu1  ;;  %v783_v8 = vpop.f32.mrb[23].mxu0 }
 0x166   : > { %v855_v34 = vsel %vm843_vm1, %v830_v44, %v831_v1  ;;  %v832_v35 = vrot.slane %v783_v8, 2  ;;  %v994_v13 = vpop.f32.mrb[23].mxu1 }
 0x167   : > { %v863_v14 = vadd.f32 %v855_v34, %v3703_v50  ;;  %v852_v15 = vsel %vm843_vm1, %v833_v4, %v834_v5 }
 0x168   : > { %v866_v16 = vadd.f32 %v852_v15, %v3709_v53  ;;  %v853_v17 = vsel %vm843_vm1, %v832_v35, %v833_v4  ;;  %v854_v11 = vsel %vm843_vm1, %v831_v1, %v832_v35 }
 0x169   : > { %v3786_v20 = vadd.f32 %v991_v2, %v863_v14  ;;  %v865_v23 = vadd.f32 %v853_v17, %v3711_v54  ;;  %v864_v24 = vadd.f32 %v854_v11, %v3713_v55 }
 0x16a   : > { %v3790_v19 = vadd.f32 %v2935_v7, %v866_v16  ;;  %v2906_v50 = vpop.f32.mrb[24].mxu0 }
 0x16b   : > { %v3792_v26 = vadd.f32 %v994_v13, %v864_v24  ;;  %v2938_v22 = vpop.f32.mrb[24].mxu1  ;;  %v796_v27 = vpop.f32.mrb[25].mxu0  ;;  %v3794_v53 = vadd.f32 %v2934_v63, %v865_v23  ;;  %v837_v36 = vrot.slane %v2906_v50, 2 }
 0x16c   : > { %v835_v25 = vrot.slane %v796_v27, 2  ;;  %v1007_v29 = vpop.f32.mrb[25].mxu1  ;;  %v2907_v32 = vpop.f32.mrb[26].mxu0 }
 0x16d   : > { %v838_v21 = vrot.slane %v2907_v32, 2  ;;  %v2939_v40 = vpop.f32.mrb[26].mxu1  ;;  %v799_v42 = vpop.f32.mrb[27].mxu0 }
 0x16e   : > { %v851_v54 = vsel %vm843_vm1, %v834_v5, %v835_v25  ;;  %v836_v55 = vrot.slane %v799_v42, 2  ;;  %v1010_v43 = vpop.f32.mrb[27].mxu1 }
 0x16f   : > { %v867_v44 = vadd.f32 %v851_v54, %v3719_v6  ;;  %v848_v45 = vsel %vm843_vm1, %v837_v36, %v838_v21 }
 0x170   : > { %v870_v46 = vadd.f32 %v848_v45, %v3725_v9  ;;  %v849_v48 = vsel %vm843_vm1, %v836_v55, %v837_v36  ;;  %v850_v49 = vsel %vm843_vm1, %v835_v25, %v836_v55 }
 0x171   : > { %v3806_v51 = vadd.f32 %v1007_v29, %v867_v44  ;;  %v869_v52 = vadd.f32 %v849_v48, %v3727_v10  ;;  %v868_v56 = vadd.f32 %v850_v49, %v3729_v12 }
 0x172   : > { %v3810_v57 = vadd.f32 %v2939_v40, %v870_v46  ;;  %v2910_v6 = vpop.f32.mrb[28].mxu0 }
 0x173   : > { %v3812_v58 = vadd.f32 %v1010_v43, %v868_v56  ;;  %v2942_v59 = vpop.f32.mrb[28].mxu1  ;;  %v812_v61 = vpop.f32.mrb[29].mxu0  ;;  %v3814_v9 = vadd.f32 %v2938_v22, %v869_v52  ;;  %v841_v2 = vrot.slane %v2910_v6, 2 }
 0x174   : > { %v839_v63 = vrot.slane %v812_v61, 2  ;;  %v1023_v0 = vpop.f32.mrb[29].mxu1  ;;  %v2911_v1 = vpop.f32.mrb[30].mxu0 }
 0x175   : > { %v842_v3 = vrot.slane %v2911_v1, 2  ;;  %v2943_v4 = vpop.f32.mrb[30].mxu1  ;;  %v815_v5 = vpop.f32.mrb[31].mxu0 }
 0x176   : > { %v847_v10 = vsel %vm843_vm1, %v838_v21, %v839_v63  ;;  %v840_v12 = vrot.slane %v815_v5, 2  ;;  %v1026_v7 = vpop.f32.mrb[31].mxu1 }
 0x177   : > { %v871_v8 = vadd.f32 %v847_v10, %v3739_v30  ;;  %v859_v34 = vsel %vm843_vm1, %v842_v3, %v827_v47  ;;  %v844_v35 = vsel %vm843_vm1, %v841_v2, %v842_v3 }
 0x178   : > { %v875_v13 = vadd.f32 %v859_v34, %v3741_v31  ;;  %v874_v14 = vadd.f32 %v844_v35, %v3747_v37  ;;  %v845_v15 = vsel %vm843_vm1, %v840_v12, %v841_v2  ;;  %v846_v16 = vsel %vm843_vm1, %v839_v63, %v840_v12 }
 0x179   : > { %v3831_v17 = vadd.f32 %v1023_v0, %v871_v8  ;;  %v873_v30 = vadd.f32 %v845_v15, %v3749_v38  ;;  %v872_v41 = vadd.f32 %v846_v16, %v3751_v39 }
 0x17a   : > { %v3835_v47 = vadd.f32 %v2943_v4, %v874_v14  ;;  %v2962_v11 = vpop.f32.mrb[32].mxu0  ;;  %v1053_v23 = vadd.f32 %v3755_v28, %v875_v13 }
 0x17b   : > { %v3838_v31 = vadd.f32 %v1026_v7, %v872_v41  ;;  %v2994_v37 = vpop.f32.mrb[32].mxu1  ;;  %v3840_v24 = vpop.f32.mrb[33].mxu0  ;;  %v3842_v50 = vadd.f32 %v2942_v59, %v873_v30  ;;  %v1218_v25 = vrot.slane %v2962_v11, 1 }
 0x17c   : > { %v3844_v22 = vpop.f32.mrb[33].mxu1  ;;  %v2963_v27 = vpop.f32.mrb[34].mxu0  ;;  %v1428_v39 = vrot.slane %v2994_v37, 2  ;;  %v1216_v36 = vrot.slane %v3840_v24, 1 }
 0x17d   : > { %v1219_v29 = vrot.slane %v2963_v27, 1  ;;  %v2995_v38 = vpop.f32.mrb[34].mxu1  ;;  %v1156_v32 = vpop.f32.mrb[35].mxu0  ;;  %v1426_v42 = vrot.slane %v3844_v22, 2 }
 0x17e   : > { %v1429_v21 = vrot.slane %v2995_v38, 2  ;;  %v1217_v40 = vrot.slane %v1156_v32, 1  ;;  %v1366_v28 = vpop.f32.mrb[35].mxu1 }
 0x17f   : > { %v1244_v54 = vsel %vm503_vm0, %v1218_v25, %v1219_v29  ;;  %v1427_v55 = vrot.slane %v1366_v28, 2 }
 0x180   : > { %v1245_v43 = vsel %vm503_vm0, %v1217_v40, %v1218_v25  ;;  %v1246_v44 = vsel %vm503_vm0, %v1216_v36, %v1217_v40  ;;  %v1249_v45 = vadd.f32 %v1244_v54, %v3774_v33  ;;  %v1454_v46 = vsel %vm843_vm1, %v1428_v39, %v1429_v21 }
 0x181   : > { %v1248_v48 = vadd.f32 %v1245_v43, %v3772_v62  ;;  %v1455_v49 = vsel %vm843_vm1, %v1427_v55, %v1428_v39  ;;  %v1263_v52 = vadd.f32 %v1246_v44, %v1053_v23  ;;  %v1456_v56 = vsel %vm843_vm1, %v1426_v42, %v1427_v55 }
 0x182   : > { %v2966_v6 = vpop.f32.mrb[36].mxu0  ;;  %v3866_v59 = vadd.f32 %v1454_v46, %v1249_v45 }
 0x183   : > { %v2998_v61 = vpop.f32.mrb[36].mxu1  ;;  %v1169_v63 = vpop.f32.mrb[37].mxu0  ;;  %v3868_v33 = vadd.f32 %v1455_v49, %v1248_v48  ;;  %v3870_v0 = vadd.f32 %v1456_v56, %v1263_v52  ;;  %v1222_v3 = vrot.slane %v2966_v6, 1 }
 0x184   : > { %v1220_v1 = vrot.slane %v1169_v63, 1  ;;  %v1379_v62 = vpop.f32.mrb[37].mxu1  ;;  %v2967_v2 = vpop.f32.mrb[38].mxu0  ;;  %v1432_v7 = vrot.slane %v2998_v61, 2 }
 0x185   : > { %v1430_v4 = vrot.slane %v1379_v62, 2  ;;  %v1223_v5 = vrot.slane %v2967_v2, 1  ;;  %v2999_v10 = vpop.f32.mrb[38].mxu1  ;;  %v1172_v12 = vpop.f32.mrb[39].mxu0 }
 0x186   : > { %v1243_v8 = vsel %vm503_vm0, %v1219_v29, %v1220_v1  ;;  %v1433_v34 = vrot.slane %v2999_v10, 2  ;;  %v1221_v35 = vrot.slane %v1172_v12, 1  ;;  %v1382_v13 = vpop.f32.mrb[39].mxu1 }
 0x187   : > { %v1240_v14 = vsel %vm503_vm0, %v1222_v3, %v1223_v5  ;;  %v1431_v15 = vrot.slane %v1382_v13, 2  ;;  %v1250_v16 = vadd.f32 %v1243_v8, %v3770_v60  ;;  %v1453_v30 = vsel %vm843_vm1, %v1429_v21, %v1430_v4 }
 0x188   : > { %v1241_v41 = vsel %vm503_vm0, %v1221_v35, %v1222_v3  ;;  %v1242_v11 = vsel %vm503_vm0, %v1220_v1, %v1221_v35  ;;  %v1253_v23 = vadd.f32 %v1240_v14, %v3794_v53  ;;  %v1450_v37 = vsel %vm843_vm1, %v1432_v7, %v1433_v34 }
 0x189   : > { %v1252_v27 = vadd.f32 %v1241_v41, %v3792_v26  ;;  %v1451_v25 = vsel %vm843_vm1, %v1431_v15, %v1432_v7  ;;  %v3889_v60 = vadd.f32 %v1453_v30, %v1250_v16  ;;  %v1251_v29 = vadd.f32 %v1242_v11, %v3786_v20 }
 0x18a   : > { %v2970_v38 = vpop.f32.mrb[40].mxu0  ;;  %v3892_v32 = vadd.f32 %v1450_v37, %v1253_v23  ;;  %v1452_v39 = vsel %vm843_vm1, %v1430_v4, %v1431_v15 }
 0x18b   : > { %v3002_v21 = vpop.f32.mrb[40].mxu1  ;;  %v1185_v53 = vpop.f32.mrb[41].mxu0  ;;  %v3896_v40 = vadd.f32 %v1451_v25, %v1252_v27  ;;  %v3898_v28 = vadd.f32 %v1452_v39, %v1251_v29  ;;  %v1226_v43 = vrot.slane %v2970_v38, 1 }
 0x18c   : > { %v1224_v26 = vrot.slane %v1185_v53, 1  ;;  %v1395_v54 = vpop.f32.mrb[41].mxu1  ;;  %v2971_v55 = vpop.f32.mrb[42].mxu0  ;;  %v1436_v48 = vrot.slane %v3002_v21, 2 }
 0x18d   : > { %v1434_v44 = vrot.slane %v1395_v54, 2  ;;  %v1227_v45 = vrot.slane %v2971_v55, 1  ;;  %v3003_v46 = vpop.f32.mrb[42].mxu1  ;;  %v1188_v20 = vpop.f32.mrb[43].mxu0 }
 0x18e   : > { %v1239_v49 = vsel %vm503_vm0, %v1223_v5, %v1224_v26  ;;  %v1437_v52 = vrot.slane %v3003_v46, 2  ;;  %v1225_v56 = vrot.slane %v1188_v20, 1  ;;  %v1398_v6 = vpop.f32.mrb[43].mxu1 }
 0x18f   : > { %v1236_v61 = vsel %vm503_vm0, %v1226_v43, %v1227_v45  ;;  %v1435_v63 = vrot.slane %v1398_v6, 2  ;;  %v1254_v1 = vadd.f32 %v1239_v49, %v3790_v19  ;;  %v1449_v62 = vsel %vm843_vm1, %v1433_v34, %v1434_v44 }
 0x190   : > { %v1237_v2 = vsel %vm503_vm0, %v1225_v56, %v1226_v43  ;;  %v1238_v3 = vsel %vm503_vm0, %v1224_v26, %v1225_v56  ;;  %v1257_v4 = vadd.f32 %v1236_v61, %v3814_v9  ;;  %v1446_v5 = vsel %vm843_vm1, %v1436_v48, %v1437_v52 }
 0x191   : > { %v1256_v10 = vadd.f32 %v1237_v2, %v3812_v58  ;;  %v1447_v12 = vsel %vm843_vm1, %v1435_v63, %v1436_v48  ;;  %v3917_v19 = vadd.f32 %v1449_v62, %v1254_v1  ;;  %v1255_v7 = vadd.f32 %v1238_v3, %v3806_v51 }
 0x192   : > { %v2974_v8 = vpop.f32.mrb[44].mxu0  ;;  %v3920_v34 = vadd.f32 %v1446_v5, %v1257_v4  ;;  %v1448_v35 = vsel %vm843_vm1, %v1434_v44, %v1435_v63 }
 0x193   : > { %v3006_v13 = vpop.f32.mrb[44].mxu1  ;;  %v1201_v9 = vpop.f32.mrb[45].mxu0  ;;  %v3924_v14 = vadd.f32 %v1447_v12, %v1256_v10  ;;  %v3926_v15 = vadd.f32 %v1448_v35, %v1255_v7  ;;  %v1230_v41 = vrot.slane %v2974_v8, 1 }
 0x194   : > { %v1228_v58 = vrot.slane %v1201_v9, 1  ;;  %v1411_v16 = vpop.f32.mrb[45].mxu1  ;;  %v2975_v30 = vpop.f32.mrb[46].mxu0  ;;  %v1440_v27 = vrot.slane %v3006_v13, 2 }
 0x195   : > { %v1438_v11 = vrot.slane %v1411_v16, 2  ;;  %v1231_v23 = vrot.slane %v2975_v30, 1  ;;  %v3007_v37 = vpop.f32.mrb[46].mxu1  ;;  %v1204_v51 = vpop.f32.mrb[47].mxu0 }
 0x196   : > { %v1235_v25 = vsel %vm503_vm0, %v1227_v45, %v1228_v58  ;;  %v1441_v29 = vrot.slane %v3007_v37, 2  ;;  %v1229_v38 = vrot.slane %v1204_v51, 1  ;;  %v1414_v39 = vpop.f32.mrb[47].mxu1 }
 0x197   : > { %v1232_v21 = vsel %vm503_vm0, %v1230_v41, %v1231_v23  ;;  %v1247_v53 = vsel %vm503_vm0, %v1231_v23, %v1216_v36  ;;  %v1439_v26 = vrot.slane %v1414_v39, 2  ;;  %v1258_v54 = vadd.f32 %v1235_v25, %v3810_v57 }
 0x198   : > { %v1233_v55 = vsel %vm503_vm0, %v1229_v38, %v1230_v41  ;;  %v1234_v43 = vsel %vm503_vm0, %v1228_v58, %v1229_v38  ;;  %v1262_v44 = vadd.f32 %v1247_v53, %v3835_v47  ;;  %v1457_v45 = vsel %vm843_vm1, %v1441_v29, %v1426_v42 }
 0x199   : > { %v1260_v24 = vadd.f32 %v1233_v55, %v3838_v31  ;;  %v1443_v36 = vsel %vm843_vm1, %v1439_v26, %v1440_v27  ;;  %v1445_v57 = vsel %vm843_vm1, %v1437_v52, %v1438_v11  ;;  %v1261_v46 = vadd.f32 %v1232_v21, %v3842_v50 }
 0x19a   : > { %v3026_v20 = vpop.f32.mrb[48].mxu0  ;;  %v1472_v48 = vadd.f32 %v1457_v45, %v1262_v44  ;;  %v3952_v49 = vadd.f32 %v1445_v57, %v1258_v54  ;;  %v1442_v47 = vsel %vm843_vm1, %v1440_v27, %v1441_v29  ;;  %v1259_v22 = vadd.f32 %v1234_v43, %v3831_v17 }
 0x19b   : > { %v1636_v42 = vadd.f32 %v3026_v20, %v3868_v33  ;;  %v3058_v31 = vpop.f32.mrb[48].mxu1  ;;  %v1573_v56 = vpop.f32.mrb[49].mxu0  ;;  %v3958_v6 = vadd.f32 %v1443_v36, %v1260_v24  ;;  %v3960_v61 = vadd.f32 %v1442_v47, %v1261_v46  ;;  %v1444_v50 = vsel %vm843_vm1, %v1438_v11, %v1439_v26 }
 0x19c   : > { %v1650_v52 = vadd.f32 %v1573_v56, %v1472_v48  ;;  %v3964_v63 = vpop.f32.mrb[49].mxu1  ;;  %v3027_v1 = vpop.f32.mrb[50].mxu0  ;;  %v3966_v62 = vadd.f32 %v1444_v50, %v1259_v22  ;;  %v1816_v33 = vrot.slane %v3058_v31, 1 }
 0x19d   : > { %v1637_v2 = vadd.f32 %v3027_v1, %v3866_v59  ;;  %v3059_v17 = vpop.f32.mrb[50].mxu1  ;;  %v1576_v3 = vpop.f32.mrb[51].mxu0  ;;  %v1814_v12 = vrot.slane %v3964_v63, 1 }
 0x19e   : > { %v1817_v4 = vrot.slane %v3059_v17, 1  ;;  %v1651_v5 = vadd.f32 %v1576_v3, %v3870_v0  ;;  %v1754_v10 = vpop.f32.mrb[51].mxu1 }
 0x19f   : > { %v1815_v7 = vrot.slane %v1754_v10, 1 }
 0x1a0   : > { %v1842_v8 = vsel %vm503_vm0, %v1816_v33, %v1817_v4 }
 0x1a1   : > { %v3973_v35 = vadd.f32 %v1842_v8, %v1636_v42  ;;  %v1843_v13 = vsel %vm503_vm0, %v1815_v7, %v1816_v33  ;;  %v1844_v59 = vsel %vm503_vm0, %v1814_v12, %v1815_v7 }
 0x1a2   : > { %v3981_v9 = vadd.f32 %v1844_v59, %v1650_v52  ;;  %v3983_v0 = vadd.f32 %v1843_v13, %v1651_v5  ;;  %v3030_v58 = vpop.f32.mrb[52].mxu0 }
 0x1a3   : > { %v1640_v16 = vadd.f32 %v3030_v58, %v3896_v40  ;;  %v3062_v30 = vpop.f32.mrb[52].mxu1  ;;  %v1589_v41 = vpop.f32.mrb[53].mxu0 }
 0x1a4   : > { %v1638_v11 = vadd.f32 %v1589_v41, %v3889_v60  ;;  %v1767_v23 = vpop.f32.mrb[53].mxu1  ;;  %v3031_v37 = vpop.f32.mrb[54].mxu0  ;;  %v1820_v38 = vrot.slane %v3062_v30, 1 }
 0x1a5   : > { %v1818_v51 = vrot.slane %v1767_v23, 1  ;;  %v1641_v27 = vadd.f32 %v3031_v37, %v3892_v32  ;;  %v3063_v25 = vpop.f32.mrb[54].mxu1  ;;  %v1592_v29 = vpop.f32.mrb[55].mxu0 }
 0x1a6   : > { %v1821_v39 = vrot.slane %v3063_v25, 1  ;;  %v1639_v21 = vadd.f32 %v1592_v29, %v3898_v28  ;;  %v1770_v53 = vpop.f32.mrb[55].mxu1 }
 0x1a7   : > { %v1841_v26 = vsel %vm503_vm0, %v1817_v4, %v1818_v51  ;;  %v1819_v40 = vrot.slane %v1770_v53, 1 }
 0x1a8   : > { %v3991_v54 = vadd.f32 %v1841_v26, %v1637_v2  ;;  %v1838_v60 = vsel %vm503_vm0, %v1820_v38, %v1821_v39 }
 0x1a9   : > { %v3995_v55 = vadd.f32 %v1838_v60, %v1640_v16  ;;  %v1839_v32 = vsel %vm503_vm0, %v1819_v40, %v1820_v38  ;;  %v1840_v43 = vsel %vm503_vm0, %v1818_v51, %v1819_v40 }
 0x1aa   : > { %v4001_v44 = vadd.f32 %v1840_v43, %v1638_v11  ;;  %v4003_v28 = vadd.f32 %v1839_v32, %v1639_v21  ;;  %v3034_v45 = vpop.f32.mrb[56].mxu0 }
 0x1ab   : > { %v1644_v24 = vadd.f32 %v3034_v45, %v3924_v14  ;;  %v3066_v36 = vpop.f32.mrb[56].mxu1  ;;  %v1605_v57 = vpop.f32.mrb[57].mxu0 }
 0x1ac   : > { %v1642_v46 = vadd.f32 %v1605_v57, %v3917_v19  ;;  %v1783_v20 = vpop.f32.mrb[57].mxu1  ;;  %v3035_v48 = vpop.f32.mrb[58].mxu0  ;;  %v1824_v56 = vrot.slane %v3066_v36, 1 }
 0x1ad   : > { %v1822_v47 = vrot.slane %v1783_v20, 1  ;;  %v1645_v22 = vadd.f32 %v3035_v48, %v3920_v34  ;;  %v3067_v42 = vpop.f32.mrb[58].mxu1  ;;  %v1608_v31 = vpop.f32.mrb[59].mxu0 }
 0x1ae   : > { %v1825_v50 = vrot.slane %v3067_v42, 1  ;;  %v1643_v52 = vadd.f32 %v1608_v31, %v3926_v15  ;;  %v1786_v1 = vpop.f32.mrb[59].mxu1 }
 0x1af   : > { %v1837_v2 = vsel %vm503_vm0, %v1821_v39, %v1822_v47  ;;  %v1823_v14 = vrot.slane %v1786_v1, 1 }
 0x1b0   : > { %v4011_v17 = vadd.f32 %v1837_v2, %v1641_v27  ;;  %v1834_v19 = vsel %vm503_vm0, %v1824_v56, %v1825_v50 }
 0x1b1   : > { %v1854_v3 = vadd.f32 %v1834_v19, %v1644_v24  ;;  %v1835_v34 = vsel %vm503_vm0, %v1823_v14, %v1824_v56  ;;  %v1836_v33 = vsel %vm503_vm0, %v1822_v47, %v1823_v14 }
 0x1b2   : > { %v1852_v4 = vadd.f32 %v1836_v33, %v1642_v46  ;;  %v1853_v5 = vadd.f32 %v1835_v34, %v1643_v52  ;;  %v3038_v15 = vpop.f32.mrb[60].mxu0 }
 0x1b3   : > { %v1648_v10 = vadd.f32 %v3038_v15, %v3958_v6  ;;  %v3070_v7 = vpop.f32.mrb[60].mxu1  ;;  %v1621_v8 = vpop.f32.mrb[61].mxu0 }
 0x1b4   : > { %v1646_v13 = vadd.f32 %v1621_v8, %v3952_v49  ;;  %v1799_v59 = vpop.f32.mrb[61].mxu1  ;;  %v3039_v58 = vpop.f32.mrb[62].mxu0  ;;  %v1828_v23 = vrot.slane %v3070_v7, 1 }
 0x1b5   : > { %v1826_v16 = vrot.slane %v1799_v59, 1  ;;  %v1649_v30 = vadd.f32 %v3039_v58, %v3960_v61  ;;  %v3071_v41 = vpop.f32.mrb[62].mxu1  ;;  %v1624_v11 = vpop.f32.mrb[63].mxu0 }
 0x1b6   : > { %v1829_v37 = vrot.slane %v3071_v41, 1  ;;  %v1647_v51 = vadd.f32 %v1624_v11, %v3966_v62  ;;  %v1802_v27 = vpop.f32.mrb[63].mxu1 }
 0x1b7   : > { %v1833_v25 = vsel %vm503_vm0, %v1825_v50, %v1826_v16  ;;  %v1827_v6 = vrot.slane %v1802_v27, 1 }
 0x1b8   : > { %v1855_v29 = vadd.f32 %v1833_v25, %v1645_v22  ;;  %v1830_v49 = vsel %vm503_vm0, %v1828_v23, %v1829_v37  ;;  %v1845_v61 = vsel %vm503_vm0, %v1829_v37, %v1814_v12 }
 0x1b9   : > { %v1858_v38 = vadd.f32 %v1830_v49, %v1648_v10  ;;  %v1859_v39 = vadd.f32 %v1845_v61, %v1649_v30  ;;  %v1831_v21 = vsel %vm503_vm0, %v1827_v6, %v1828_v23  ;;  %v1832_v62 = vsel %vm503_vm0, %v1826_v16, %v1827_v6 }
 0x1ba   : > { %v4035_v53 = vadd.f32 %v1832_v62, %v1646_v13  ;;  %v4037_v26 = vadd.f32 %v1831_v21, %v1647_v51  ;;  %v3090_v40 = vpop.f32.mrb[64].mxu0 }
 0x1bb   : > { %v3098_v60 = vpop.f32.mrb[64].mxu1  ;;  %v1961_v32 = vpop.f32.mrb[65].mxu0  ;;  %v2026_v45 = vrot.slane %v3090_v40, 2 }
 0x1bc   : > { %v1993_v43 = vpop.f32.mrb[65].mxu1  ;;  %v3091_v63 = vpop.f32.mrb[66].mxu0  ;;  %v2034_v57 = vrot.slane %v3098_v60, 2  ;;  %v2024_v46 = vrot.slane %v1961_v32, 2 }
 0x1bd   : > { %v2027_v24 = vrot.slane %v3091_v63, 2  ;;  %v3099_v12 = vpop.f32.mrb[66].mxu1  ;;  %v1964_v36 = vpop.f32.mrb[67].mxu0  ;;  %v2032_v22 = vrot.slane %v1993_v43, 2 }
 0x1be   : > { %v2035_v20 = vrot.slane %v3099_v12, 2  ;;  %v2025_v48 = vrot.slane %v1964_v36, 2  ;;  %v1996_v47 = vpop.f32.mrb[67].mxu1 }
 0x1bf   : > { %v2052_v42 = vsel %vm843_vm1, %v2026_v45, %v2027_v24  ;;  %v2033_v31 = vrot.slane %v1996_v47, 2 }
 0x1c0   : > { %v4042_v56 = vadd.f32 %v2052_v42, %v3973_v35  ;;  %v2044_v50 = vsel %vm843_vm1, %v2034_v57, %v2035_v20  ;;  %v2053_v52 = vsel %vm843_vm1, %v2025_v48, %v2026_v45  ;;  %v2054_v1 = vsel %vm843_vm1, %v2024_v46, %v2025_v48 }
 0x1c1   : > { %v4050_v2 = vadd.f32 %v2044_v50, %v1854_v3  ;;  %v4053_v14 = vadd.f32 %v2054_v1, %v3981_v9  ;;  %v4056_v19 = vadd.f32 %v2053_v52, %v3983_v0  ;;  %v2045_v35 = vsel %vm843_vm1, %v2033_v31, %v2034_v57 }
 0x1c2   : > { %v2046_v34 = vsel %vm843_vm1, %v2032_v22, %v2033_v31  ;;  %v4062_v33 = vadd.f32 %v2045_v35, %v1853_v5  ;;  %v3094_v15 = vpop.f32.mrb[68].mxu0  ;;  %2076 = vst [vmem:[#allocation2] sm:$0xff] (!%p2584_p4), %v4042_v56 }
 0x1c3   : > { %v4064_v10 = vadd.f32 %v2046_v34, %v1852_v4  ;;  %v3102_v7 = vpop.f32.mrb[68].mxu1  ;;  %v1977_v3 = vpop.f32.mrb[69].mxu0  ;;  %v2030_v59 = vrot.slane %v3094_v15, 2  ;;  %2084 = vst [vmem:[#allocation2 + $0x40] sm:$0xff] (!%p2584_p4), %v4050_v2  ;;  %2090 = vst [vmem:[#allocation2 + $0x70] sm:$0xff] (!%p2584_p4), %v4053_v14 }
 0x1c4   : > { %v2028_v8 = vrot.slane %v1977_v3, 2  ;;  %v2009_v13 = vpop.f32.mrb[69].mxu1  ;;  %v3095_v9 = vpop.f32.mrb[70].mxu0  ;;  %v2038_v41 = vrot.slane %v3102_v7, 2  ;;  %2083 = vst [vmem:[#allocation2 + $0x38] sm:$0xff] (!%p2584_p4), %v4062_v33  ;;  %2091 = vst [vmem:[#allocation2 + $0x78] sm:$0xff] (!%p2584_p4), %v4056_v19 }
 0x1c5   : > { %v2036_v58 = vrot.slane %v2009_v13, 2  ;;  %v2031_v0 = vrot.slane %v3095_v9, 2  ;;  %v3103_v16 = vpop.f32.mrb[70].mxu1  ;;  %v1980_v30 = vpop.f32.mrb[71].mxu0  ;;  %2082 = vst [vmem:[#allocation2 + $0x30] sm:$0xff] (!%p2584_p4), %v4064_v10 }
 0x1c6   : > { %v2051_v11 = vsel %vm843_vm1, %v2027_v24, %v2028_v8  ;;  %v2039_v23 = vrot.slane %v3103_v16, 2  ;;  %v2029_v5 = vrot.slane %v1980_v30, 2  ;;  %v2012_v37 = vpop.f32.mrb[71].mxu1 }
 0x1c7   : > { %v2057_v4 = vadd.f32 %v2051_v11, %v3991_v54  ;;  %v2043_v51 = vsel %vm843_vm1, %v2035_v20, %v2036_v58  ;;  %v2047_v27 = vsel %vm843_vm1, %v2031_v0, %v2032_v22  ;;  %v2048_v25 = vsel %vm843_vm1, %v2030_v59, %v2031_v0  ;;  %2075 = sbr.rel (%p2584_p4) target bundleno = 464 (0x1d0), region = 44 }
 0x1c8   : > { %v4075_v6 = vadd.f32 %v2043_v51, %v1855_v29  ;;  %v2060_v49 = vadd.f32 %v2048_v25, %v3995_v55  ;;  %v2061_v61 = vadd.f32 %v2047_v27, %v4011_v17  ;;  %v2040_v21 = vsel %vm843_vm1, %v2038_v41, %v2039_v23 }
 0x1c9   : > { %v2055_v54 = vsel %vm843_vm1, %v2039_v23, %v2024_v46  ;;  %v4083_v62 = vadd.f32 %v2040_v21, %v1858_v38  ;;  %v2049_v40 = vsel %vm843_vm1, %v2029_v5, %v2030_v59  ;;  %v2050_v60 = vsel %vm843_vm1, %v2028_v8, %v2029_v5  ;;  %2077 = vst [vmem:[#allocation2 + $0x8] sm:$0xff] (!%p2584_p4), %v2057_v4 }
 0x1ca   : > { %v4089_v29 = vadd.f32 %v2055_v54, %v1859_v39  ;;  %v2058_v55 = vadd.f32 %v2050_v60, %v4001_v44  ;;  %v2059_v17 = vadd.f32 %v2049_v40, %v4003_v28  ;;  %v2037_v32 = vrot.slane %v2012_v37, 2  ;;  %2080 = vst [vmem:[#allocation2 + $0x20] sm:$0xff] (!%p2584_p4), %v2060_v49  ;;  %2081 = vst [vmem:[#allocation2 + $0x28] sm:$0xff] (!%p2584_p4), %v2061_v61 }
 0x1cb   : > { %2085 = vst [vmem:[#allocation2 + $0x48] sm:$0xff] (!%p2584_p4), %v4075_v6  ;;  %2088 = vst [vmem:[#allocation2 + $0x60] sm:$0xff] (!%p2584_p4), %v4083_v62 }
 0x1cc   : > { %v2041_v43 = vsel %vm843_vm1, %v2037_v32, %v2038_v41  ;;  %v2042_v38 = vsel %vm843_vm1, %v2036_v58, %v2037_v32  ;;  %2078 = vst [vmem:[#allocation2 + $0x10] sm:$0xff] (!%p2584_p4), %v2058_v55  ;;  %2079 = vst [vmem:[#allocation2 + $0x18] sm:$0xff] (!%p2584_p4), %v2059_v17 }
 0x1cd   : > { %v2066_v63 = vadd.f32 %v2042_v38, %v4035_v53  ;;  %v2067_v45 = vadd.f32 %v2041_v43, %v4037_v26  ;;  %2089 = vst [vmem:[#allocation2 + $0x68] sm:$0xff] (!%p2584_p4), %v4089_v29 }
 0x1cf   : > { %2086 = vst [vmem:[#allocation2 + $0x50] sm:$0xff] %v2066_v63  ;;  %2087 = vst [vmem:[#allocation2 + $0x58] sm:$0xff] %v2067_v45 }
 0x1d0 PF: > { %p2585_p6 = scmp.le.s32.totalorder %s3413_s16, 0 }
 0x1d1   : > { %v2096_v18 = vld [vmem:[#allocation2] sm:$0xff] (!%p2585_p6)  ;;  %v2102_v48 = vld [vmem:[#allocation2 + $0x30] sm:$0xff] (!%p2585_p6)  ;;  %v2103_v47 = vld [vmem:[#allocation2 + $0x38] sm:$0xff] (!%p2585_p6) }
 0x1d2   : > { %2095 = sbr.rel (%p2585_p6) target bundleno = 476 (0x1dc), region = 48  ;;  %v2097_v44 = vld [vmem:[#allocation2 + $0x8] sm:$0xff] (!%p2585_p6)  ;;  %v2112_v39 = vadd.f32 (!%p2585_p6), %v2096_v18, %v4042_v56  ;;  %v2104_v22 = vld [vmem:[#allocation2 + $0x40] sm:$0xff] (!%p2585_p6)  ;;  %v2118_v42 = vadd.f32 (!%p2585_p6), %v2102_v48, %v4064_v10  ;;  %v2119_v31 = vadd.f32 (!%p2585_p6), %v2103_v47, %v4062_v33  ;;  %v2110_v8 = vld [vmem:[#allocation2 + $0x70] sm:$0xff] (!%p2585_p6) }
 0x1d3   : > { %v2113_v53 = vadd.f32 (!%p2585_p6), %v2097_v44, %v2057_v4  ;;  %v2100_v12 = vld [vmem:[#allocation2 + $0x20] sm:$0xff] (!%p2585_p6)  ;;  %v2101_v36 = vld [vmem:[#allocation2 + $0x28] sm:$0xff] (!%p2585_p6)  ;;  %v2120_v56 = vadd.f32 (!%p2585_p6), %v2104_v22, %v4050_v2  ;;  %v2126_v10 = vadd.f32 (!%p2585_p6), %v2110_v8, %v4053_v14  ;;  %v2111_v13 = vld [vmem:[#allocation2 + $0x78] sm:$0xff] (!%p2585_p6) }
 0x1d4   : > { %v2116_v46 = vadd.f32 (!%p2585_p6), %v2100_v12, %v2060_v49  ;;  %v2117_v20 = vadd.f32 (!%p2585_p6), %v2101_v36, %v2061_v61  ;;  %2128 = vst [vmem:[#allocation2] sm:$0xff] (!%p2585_p6), %v2112_v39  ;;  %v2105_v50 = vld [vmem:[#allocation2 + $0x48] sm:$0xff] (!%p2585_p6)  ;;  %v2108_v7 = vld [vmem:[#allocation2 + $0x60] sm:$0xff] (!%p2585_p6)  ;;  %2134 = vst [vmem:[#allocation2 + $0x30] sm:$0xff] (!%p2585_p6), %v2118_v42  ;;  %v2127_v9 = vadd.f32 (!%p2585_p6), %v2111_v13, %v4056_v19 }
 0x1d5   : > { %v2098_v28 = vld [vmem:[#allocation2 + $0x10] sm:$0xff] (!%p2585_p6)  ;;  %v2099_v24 = vld [vmem:[#allocation2 + $0x18] sm:$0xff] (!%p2585_p6)  ;;  %2129 = vst [vmem:[#allocation2 + $0x8] sm:$0xff] (!%p2585_p6), %v2113_v53  ;;  %v2121_v35 = vadd.f32 (!%p2585_p6), %v2105_v50, %v4075_v6  ;;  %2135 = vst [vmem:[#allocation2 + $0x38] sm:$0xff] (!%p2585_p6), %v2119_v31  ;;  %v2124_v33 = vadd.f32 (!%p2585_p6), %v2108_v7, %v4083_v62 }
 0x1d6   : > { %v2114_v26 = vadd.f32 (!%p2585_p6), %v2098_v28, %v2058_v55  ;;  %v2115_v57 = vadd.f32 (!%p2585_p6), %v2099_v24, %v2059_v17  ;;  %v2106_v52 = vld [vmem:[#allocation2 + $0x50] sm:$0xff] (!%p2585_p6)  ;;  %v2107_v1 = vld [vmem:[#allocation2 + $0x58] sm:$0xff] (!%p2585_p6)  ;;  %2132 = vst [vmem:[#allocation2 + $0x20] sm:$0xff] (!%p2585_p6), %v2116_v46  ;;  %2133 = vst [vmem:[#allocation2 + $0x28] sm:$0xff] (!%p2585_p6), %v2117_v20 }
 0x1d7   : > { %v2122_v34 = vadd.f32 (!%p2585_p6), %v2106_v52, %v2066_v63  ;;  %v2123_v15 = vadd.f32 (!%p2585_p6), %v2107_v1, %v2067_v45  ;;  %v2109_v3 = vld [vmem:[#allocation2 + $0x68] sm:$0xff] (!%p2585_p6)  ;;  %2136 = vst [vmem:[#allocation2 + $0x40] sm:$0xff] (!%p2585_p6), %v2120_v56  ;;  %2137 = vst [vmem:[#allocation2 + $0x48] sm:$0xff] (!%p2585_p6), %v2121_v35 }
 0x1d8   : > { %2130 = vst [vmem:[#allocation2 + $0x10] sm:$0xff] (!%p2585_p6), %v2114_v26  ;;  %2131 = vst [vmem:[#allocation2 + $0x18] sm:$0xff] (!%p2585_p6), %v2115_v57  ;;  %v2125_v2 = vadd.f32 (!%p2585_p6), %v2109_v3, %v4089_v29 }
 0x1d9   : > { %2138 = vst [vmem:[#allocation2 + $0x50] sm:$0xff] %v2122_v34  ;;  %2139 = vst [vmem:[#allocation2 + $0x58] sm:$0xff] %v2123_v15 }
 0x1da   : > { %2140 = vst [vmem:[#allocation2 + $0x60] sm:$0xff] %v2124_v33  ;;  %2141 = vst [vmem:[#allocation2 + $0x68] sm:$0xff] %v2125_v2 }
 0x1db   : > { %2142 = vst [vmem:[#allocation2 + $0x70] sm:$0xff] %v2126_v10  ;;  %2143 = vst [vmem:[#allocation2 + $0x78] sm:$0xff] %v2127_v9 }
 0x1dc PF: > { %p2586_p1 = scmp.ne.s32.totalorder %s3413_s16, 1 }
 0x1dd   : > { %v2587_v14 = vld [vmem:[%s4161_s2] ss:$0 sm:$0xff] (!%p2586_p1) }
 0x1de   : > { %2147 = sbr.rel (%p2586_p1) target bundleno = 495 (0x1ef), region = 52  ;;  %v2148_v59 = vld [vmem:[#allocation2] sm:$0xff] (!%p2586_p1)  ;;  %v2154_v4 = vld [vmem:[#allocation2 + $0x30] sm:$0xff] (!%p2586_p1) }
 0x1df   : > { %v2149_v58 = vld [vmem:[#allocation2 + $0x8] sm:$0xff] (!%p2586_p1)  ;;  %v2171_v0 = vadd.f32 (!%p2586_p1), %v2587_v14, %v2148_v59  ;;  %v2155_v51 = vld [vmem:[#allocation2 + $0x38] sm:$0xff] (!%p2586_p1)  ;;  %v2177_v49 = vadd.f32 (!%p2586_p1), %v2587_v14, %v2154_v4 }
 0x1e0   : > { %v2172_v16 = vadd.f32 (!%p2586_p1), %v2587_v14, %v2149_v58  ;;  %v2152_v11 = vld [vmem:[#allocation2 + $0x20] sm:$0xff] (!%p2586_p1)  ;;  %v2153_v5 = vld [vmem:[#allocation2 + $0x28] sm:$0xff] (!%p2586_p1)  ;;  %v2178_v29 = vadd.f32 (!%p2586_p1), %v2587_v14, %v2155_v51 }
 0x1e1   : > { %v2175_v37 = vadd.f32 (!%p2586_p1), %v2587_v14, %v2152_v11  ;;  %v2187_v27 = vmax.f32 (!%p2586_p1), %v2171_v0, 0.0  ;;  %v2176_v6 = vadd.f32 (!%p2586_p1), %v2587_v14, %v2153_v5  ;;  %v2156_v61 = vld [vmem:[#allocation2 + $0x40] sm:$0xff] (!%p2586_p1)  ;;  %v2157_v21 = vld [vmem:[#allocation2 + $0x48] sm:$0xff] (!%p2586_p1)  ;;  %v2193_v38 = vmax.f32 (!%p2586_p1), %v2177_v49, 0.0 }
 0x1e2   : > { %v2150_v30 = vld [vmem:[#allocation2 + $0x10] sm:$0xff] (!%p2586_p1)  ;;  %v2151_v41 = vld [vmem:[#allocation2 + $0x18] sm:$0xff] (!%p2586_p1)  ;;  %v2188_v25 = vmax.f32 (!%p2586_p1), %v2172_v16, 0.0  ;;  %v2160_v17 = vld [vmem:[#allocation2 + $0x60] sm:$0xff] (!%p2586_p1)  ;;  %v2179_v63 = vadd.f32 (!%p2586_p1), %v2587_v14, %v2156_v61  ;;  %v2194_v44 = vmax.f32 (!%p2586_p1), %v2178_v29, 0.0  ;;  %v2180_v28 = vadd.f32 (!%p2586_p1), %v2587_v14, %v2157_v21 }
 0x1e3   : > { %v2173_v19 = vadd.f32 (!%p2586_p1), %v2587_v14, %v2150_v30  ;;  %v2174_v23 = vadd.f32 (!%p2586_p1), %v2587_v14, %v2151_v41  ;;  %v2158_v54 = vld [vmem:[#allocation2 + $0x50] sm:$0xff] (!%p2586_p1)  ;;  %v2191_v60 = vmax.f32 (!%p2586_p1), %v2175_v37, 0.0  ;;  %v2159_v55 = vld [vmem:[#allocation2 + $0x58] sm:$0xff] (!%p2586_p1)  ;;  %v2192_v43 = vmax.f32 (!%p2586_p1), %v2176_v6, 0.0  ;;  %v2161_v45 = vld [vmem:[#allocation2 + $0x68] sm:$0xff] (!%p2586_p1) }
 0x1e4   : > { %v2628_v32 = vpack.c.bf16 (!%p2586_p1), %v2188_v25, %v2187_v27  ;;  %v2181_v39 = vadd.f32 (!%p2586_p1), %v2587_v14, %v2158_v54  ;;  %v2162_v53 = vld [vmem:[#allocation2 + $0x70] sm:$0xff] (!%p2586_p1)  ;;  %v2163_v26 = vld [vmem:[#allocation2 + $0x78] sm:$0xff] (!%p2586_p1)  ;;  %v2195_v12 = vmax.f32 (!%p2586_p1), %v2179_v63, 0.0  ;;  %v2182_v36 = vadd.f32 (!%p2586_p1), %v2587_v14, %v2159_v55 }
 0x1e5   : > { %v2189_v62 = vmax.f32 %v2173_v19, 0.0  ;;  %v2190_v40 = vmax.f32 %v2174_v23, 0.0  ;;  %v2638_v24 = vpack.c.bf16 %v2192_v43, %v2191_v60  ;;  %v2183_v57 = vadd.f32 %v2587_v14, %v2160_v17 }
 0x1e6   : > { %2629 = vst [vmem:[#allocation8] sm:$0xff] %v2628_v32   ;;  %v2643_v46 = vpack.c.bf16 %v2194_v44, %v2193_v38  ;;  %v2196_v20 = vmax.f32 %v2180_v28, 0.0  ;;  %v2197_v48 = vmax.f32 %v2181_v39, 0.0  ;;  %v2184_v47 = vadd.f32 %v2587_v14, %v2161_v45 }
 0x1e7   : > { %v2633_v18 = vpack.c.bf16 %v2190_v40, %v2189_v62  ;;  %2666 = vst [vmem:[#allocation8 + $0x10] sm:$0xff] %v2638_v24   ;;  %v2198_v22 = vmax.f32 %v2182_v36, 0.0  ;;  %v2199_v42 = vmax.f32 %v2183_v57, 0.0  ;;  %v2185_v31 = vadd.f32 %v2587_v14, %v2162_v53 }
 0x1e8   : > { %v2186_v56 = vadd.f32 %v2587_v14, %v2163_v26  ;;  %2667 = vst [vmem:[#allocation8 + $0x18] sm:$0xff] %v2643_v46   ;;  %v2648_v50 = vpack.c.bf16 %v2196_v20, %v2195_v12  ;;  %v2200_v52 = vmax.f32 %v2184_v47, 0.0 }
 0x1e9   : > { %2665 = vst [vmem:[#allocation8 + $0x8] sm:$0xff] %v2633_v18   ;;  %v2653_v1 = vpack.c.bf16 %v2198_v22, %v2197_v48  ;;  %v2201_v35 = vmax.f32 %v2185_v31, 0.0 }
 0x1ea   : > { %v2202_v34 = vmax.f32 %v2186_v56, 0.0  ;;  %2668 = vst [vmem:[#allocation8 + $0x20] sm:$0xff] %v2648_v50   ;;  %v2658_v15 = vpack.c.bf16 %v2200_v52, %v2199_v42 }
 0x1eb   : > { %2669 = vst [vmem:[#allocation8 + $0x28] sm:$0xff] %v2653_v1  }
 0x1ec   : > { %v2663_v7 = vpack.c.bf16 %v2202_v34, %v2201_v35  ;;  %2670 = vst [vmem:[#allocation8 + $0x30] sm:$0xff] %v2658_v15  }
 0x1ee   : > { %2671 = vst [vmem:[#allocation8 + $0x38] sm:$0xff] %v2663_v7  }
 0x1ef PF: > { %p3137_p2 = scmp.eq.s32.totalorder %s3413_s16, 1  ;;  %s3371_s8 = smov [#allocation8]  }
 0x1f0   : > { %s2289_s9 = sshll.u32 %s3371_s8, 4  ;;  %s2290_s9 = int_to_ptr.vmem [resolvable:$true] %s2289_s9 }
 0x1f1   : > { %s3291_s28 = scalar_lea.vmem %s2290_s9, 1024  ;;  %p3298_p8 = scmp.lt.s32.totalorder %s2290_s9, %s2290_s9 }
 0x1f2   : > { %p3292_p3 = scmp.ne.s32.totalorder %s2290_s9, %s3291_s28  ;;  %p3299_p9 = scmp.lt.s32.totalorder %s3291_s28, %s3291_s28 }
 0x1f4   : > { %p3293_p5 = pnand %p3292_p3, %p3137_p2  ;;  %p3300_p11 = por %p3299_p9, %p3298_p8 }
 0x1f6   : > { %p3294_p7 = pneg %p3293_p5 }
 0x1f8   : > { %p3301_p12 = pnand %p3300_p11, %p3294_p7 }
 0x1fa   : > { %3304 = shalt.err (!%p3301_p12)
}
 0x1fb   : > { %s3305_s10 = scalar_lea.hbm %s4162_s3, 1024 }
 0x1fc   : > { %p3306_p10 = scmp.ne.s32.totalorder %s4162_s3, %s3305_s10  ;;  %p3311_p4 = scmp.lt.u32.totalorder %s3305_s10, %s4162_s3 }
 0x1fe   : > { %p3307_p13 = pnand %p3306_p10, %p3137_p2 }
 0x200   : > { %p3308_p0 = pneg %p3307_p13 }
 0x202   : > { %p3313_p6 = pnand %p3311_p4, %p3308_p0 }
 0x204   : > { %3316 = shalt.err (!%p3313_p6)
}
 0x205   : > { %s3372_s24 = smov 64   ;;  %s3373_s25 = smov 4  }
 0x206   : > { %3134 = dma.vmem_to_hbm [thread:$0]  (%p3137_p2), %s2290_s9, 1024, %s4162_s3, [#allocation5], %s3372_s24, %s3372_s24, %s3373_s25  }
 0x207   : > { %3342 = dma.done.wait (%p3137_p2), [#allocation5], 1024  }
 0x208   : > { %3344 = vsyncadd (%p3137_p2), [#allocation5], 4294966272 }
 0x209 PF: > { %p17_p1 = scmp.ge.s32.totalorder %s3416_s17, 4   ;;  %s4165_s12 = smov %s3351_s13 }
 0x20a   : > { %s4166_s13 = smov %s3355_s14  ;;  %s4167_s14 = smov %s3426_s20 }
 0x20b   : > { %s4168_s15 = smov %s3416_s17  ;;  %19 = sbr.rel (!%p17_p1) target bundleno = 6 (0x6), region = 107 }
 0x212   :  { %2305 = vsyncpa [#allocation4], 1 }
 0x213   :  { %2307 = vsyncpa [#allocation4 + $0x1], 1 }
 0x214   :  { %2308 = vsyncpa [#allocation7], 1 }
 0x215   :  { %2310 = vsyncpa [#allocation7 + $0x1], 1 }
 0x216   :  { %2311 = vsyncpa [#allocation5], 1 }
 0x217   :  { %2313 = vsyncpa [#allocation5 + $0x1], 1 }

</bundles_post_ra>
